<compile_context>
chip_gen: v6e
topology: v6e:2x2x1
jax: 0.10.0
libtpu: 0.0.40
codegen_flags: <defaults>
</compile_context>

<pallas_src>
import jax
import jax.numpy as jnp
from jax.experimental import pallas as pl
from jax.experimental.pallas import tpu as pltpu

C1 = 0.01 ** 2
C2 = 0.03 ** 2


def _ssim_kernel(x_ref, y_ref, out_ref):
    # x_ref / y_ref / out_ref block: (TB, H, W)
    _, H, W = out_ref.shape

    x = x_ref[...].astype(jnp.float32)
    y = y_ref[...].astype(jnp.float32)

    def reflect_pad1(a):
        # In-VMEM ReflectionPad2d(1): (TB, H, W) -> (TB, H+2, W+2).
        # Corner semantics match nn.ReflectionPad2d (reflect both axes).
        a = jnp.concatenate([a[:, :, 1:2], a, a[:, :, W - 2:W - 1]], axis=2)
        a = jnp.concatenate([a[:, 1:2, :], a, a[:, H - 2:H - 1, :]], axis=1)
        return a

    def pool3x3(a):
        # Separable 3x3 mean pool (stride 1) on a padded (TB, H+2, W+2) tile:
        # horizontal 3-tap (lane axis) then vertical 3-tap (sublane axis).
        h = a[:, :, 0:W] + a[:, :, 1:W + 1] + a[:, :, 2:W + 2]          # (TB, H+2, W)
        return (h[:, 0:H, :] + h[:, 1:H + 1, :] + h[:, 2:H + 2, :]) * (1.0 / 9.0)

    xp = reflect_pad1(x)
    yp = reflect_pad1(y)

    mu_x = pool3x3(xp)
    mu_y = pool3x3(yp)
    sigma_x = pool3x3(xp * xp) - mu_x * mu_x
    sigma_y = pool3x3(yp * yp) - mu_y * mu_y
    sigma_xy = pool3x3(xp * yp) - mu_x * mu_y

    ssim_n = (2.0 * mu_x * mu_y + C1) * (2.0 * sigma_xy + C2)
    ssim_d = (mu_x * mu_x + mu_y * mu_y + C1) * (sigma_x + sigma_y + C2)

    # Divide on the (otherwise idle) EUP slot; two Newton refinements keep the
    # result well inside the 1e-5 tolerance.  ssim_d > 0 always (C1, C2 > 0).
    inv_d = pl.reciprocal(ssim_d, approx=True)
    inv_d = inv_d * (2.0 - ssim_d * inv_d)
    inv_d = inv_d * (2.0 - ssim_d * inv_d)

    out_ref[...] = jnp.clip((1.0 - ssim_n * inv_d) * 0.5, 0.0, 1.0)


def _choose_block_images(n_imgs, h, w, itemsize, target_bytes=1 << 20):
    """Largest divisor of n_imgs whose input block stays <= target_bytes,
    while keeping at least 2 grid steps (v7x has 2 TensorCores)."""
    per_img = h * w * itemsize
    tb = 1
    for d in range(1, n_imgs + 1):
        if n_imgs % d == 0 and d * per_img <= target_bytes:
            tb = d
    if n_imgs >= 2 and n_imgs // tb < 2:
        for d in range(tb - 1, 0, -1):
            if n_imgs % d == 0:
                tb = d
                break
    return tb


def ssim(x, y):
    """x, y: (B, C, H, W) float32 (or bf16).  Returns (B, C, H, W) float32
    SSIM loss map identical to the PyTorch SSIM module's forward."""
    B, C, H, W = x.shape
    N = B * C

    # Free reshapes (no data movement): one leading "image" axis.
    x3 = x.reshape(N, H, W)
    y3 = y.reshape(N, H, W)

    TB = _choose_block_images(N, H, W, jnp.dtype(x3.dtype).itemsize)
    grid = (N // TB,)

    out = pl.pallas_call(
        _ssim_kernel,
        out_shape=jax.ShapeDtypeStruct((N, H, W), jnp.float32),
        grid=grid,
        in_specs=[
            pl.BlockSpec((TB, H, W), lambda i: (i, 0, 0)),
            pl.BlockSpec((TB, H, W), lambda i: (i, 0, 0)),
        ],
        out_specs=pl.BlockSpec((TB, H, W), lambda i: (i, 0, 0)),
        compiler_params=pltpu.CompilerParams(
            dimension_semantics=("parallel",),
            vmem_limit_bytes=32 * 1024 * 1024,
        ),
    )(x3, y3)

    return out.reshape(B, C, H, W)


def _ssim_reference(x, y):
    """Pure-JAX reference mirroring the PyTorch module exactly."""
    xp = jnp.pad(x, ((0, 0), (0, 0), (1, 1), (1, 1)), mode="reflect")
    yp = jnp.pad(y, ((0, 0), (0, 0), (1, 1), (1, 1)), mode="reflect")
    H, W = x.shape[2], x.shape[3]

    def pool(a):
        s = jnp.zeros_like(a[:, :, :H, :W])
        for di in range(3):
            for dj in range(3):
                s = s + a[:, :, di:di + H, dj:dj + W]
        return s / 9.0

    mu_x = pool(xp)
    mu_y = pool(yp)
    sigma_x = pool(xp * xp) - mu_x ** 2
    sigma_y = pool(yp * yp) - mu_y ** 2
    sigma_xy = pool(xp * yp) - mu_x * mu_y
    n = (2 * mu_x * mu_y + C1) * (2 * sigma_xy + C2)
    d = (mu_x ** 2 + mu_y ** 2 + C1) * (sigma_x + sigma_y + C2)
    return jnp.clip((1 - n / d) / 2, 0.0, 1.0)


if __name__ == "__main__":
    key = jax.random.PRNGKey(0)
    kx, ky = jax.random.split(key)
    B, C, H, W = 2, 4, 16, 16
    x = jax.random.uniform(kx, (B, C, H, W), dtype=jnp.float32)
    y = jax.random.uniform(ky, (B, C, H, W), dtype=jnp.float32)

    out = jax.block_until_ready(ssim(x, y))
    ref = jax.block_until_ready(_ssim_reference(x, y))

    assert out.shape == (B, C, H, W)
    max_err = float(jnp.max(jnp.abs(out - ref)))
    assert max_err < 1e-5, f"max abs err = {max_err}"
    print("KERNEL_OK")
</pallas_src>

<mosaic_0001>
module attributes {stable_mosaic.version = 11 : i64} {
  func.func @_ssim_kernel(%arg0: i32, %arg1: memref<4x16x16xf32, #tpu.memory_space<vmem>>, %arg2: memref<4x16x16xf32, #tpu.memory_space<vmem>>, %arg3: memref<4x16x16xf32, #tpu.memory_space<vmem>>) attributes {dimension_semantics = [#tpu.dimension_semantics<parallel>], iteration_bounds = array<i64: 2>, scalar_prefetch = 0 : i64, scratch_operands = 0 : i64, tpu.core_type = #tpu.core_type<tc>, window_params = [{transform_indices = @transform_0, window_bounds = array<i64: 4, 16, 16>}, {transform_indices = @transform_1, window_bounds = array<i64: 4, 16, 16>}, {transform_indices = @transform_2, window_bounds = array<i64: 4, 16, 16>}]} {
    %c0 = arith.constant 0 : index
    %c0_0 = arith.constant 0 : index
    %c0_1 = arith.constant 0 : index
    %0 = vector.load %arg1[%c0, %c0_0, %c0_1] : memref<4x16x16xf32, #tpu.memory_space<vmem>>, vector<4x16x16xf32>
    %c0_2 = arith.constant 0 : index
    %c0_3 = arith.constant 0 : index
    %c0_4 = arith.constant 0 : index
    %1 = vector.load %arg2[%c0_2, %c0_3, %c0_4] : memref<4x16x16xf32, #tpu.memory_space<vmem>>, vector<4x16x16xf32>
    %2 = vector.extract_strided_slice %0 {offsets = [0, 0, 1], sizes = [4, 16, 1], strides = [1, 1, 1]} : vector<4x16x16xf32> to vector<4x16x1xf32>
    %3 = vector.extract_strided_slice %0 {offsets = [0, 0, 14], sizes = [4, 16, 1], strides = [1, 1, 1]} : vector<4x16x16xf32> to vector<4x16x1xf32>
    %4 = tpu.concatenate %2, %0, %3 in 2 : vector<4x16x1xf32>, vector<4x16x16xf32>, vector<4x16x1xf32> -> vector<4x16x18xf32>
    %5 = vector.extract_strided_slice %4 {offsets = [0, 1, 0], sizes = [4, 1, 18], strides = [1, 1, 1]} : vector<4x16x18xf32> to vector<4x1x18xf32>
    %6 = vector.extract_strided_slice %4 {offsets = [0, 14, 0], sizes = [4, 1, 18], strides = [1, 1, 1]} : vector<4x16x18xf32> to vector<4x1x18xf32>
    %7 = tpu.concatenate %5, %4, %6 in 1 : vector<4x1x18xf32>, vector<4x16x18xf32>, vector<4x1x18xf32> -> vector<4x18x18xf32>
    %8 = vector.extract_strided_slice %1 {offsets = [0, 0, 1], sizes = [4, 16, 1], strides = [1, 1, 1]} : vector<4x16x16xf32> to vector<4x16x1xf32>
    %9 = vector.extract_strided_slice %1 {offsets = [0, 0, 14], sizes = [4, 16, 1], strides = [1, 1, 1]} : vector<4x16x16xf32> to vector<4x16x1xf32>
    %10 = tpu.concatenate %8, %1, %9 in 2 : vector<4x16x1xf32>, vector<4x16x16xf32>, vector<4x16x1xf32> -> vector<4x16x18xf32>
    %11 = vector.extract_strided_slice %10 {offsets = [0, 1, 0], sizes = [4, 1, 18], strides = [1, 1, 1]} : vector<4x16x18xf32> to vector<4x1x18xf32>
    %12 = vector.extract_strided_slice %10 {offsets = [0, 14, 0], sizes = [4, 1, 18], strides = [1, 1, 1]} : vector<4x16x18xf32> to vector<4x1x18xf32>
    %13 = tpu.concatenate %11, %10, %12 in 1 : vector<4x1x18xf32>, vector<4x16x18xf32>, vector<4x1x18xf32> -> vector<4x18x18xf32>
    %14 = vector.extract_strided_slice %7 {offsets = [0, 0, 0], sizes = [4, 18, 16], strides = [1, 1, 1]} : vector<4x18x18xf32> to vector<4x18x16xf32>
    %15 = vector.extract_strided_slice %7 {offsets = [0, 0, 1], sizes = [4, 18, 16], strides = [1, 1, 1]} : vector<4x18x18xf32> to vector<4x18x16xf32>
    %16 = arith.addf %14, %15 : vector<4x18x16xf32>
    %17 = vector.extract_strided_slice %7 {offsets = [0, 0, 2], sizes = [4, 18, 16], strides = [1, 1, 1]} : vector<4x18x18xf32> to vector<4x18x16xf32>
    %18 = arith.addf %16, %17 : vector<4x18x16xf32>
    %19 = vector.extract_strided_slice %18 {offsets = [0, 0, 0], sizes = [4, 16, 16], strides = [1, 1, 1]} : vector<4x18x16xf32> to vector<4x16x16xf32>
    %20 = vector.extract_strided_slice %18 {offsets = [0, 1, 0], sizes = [4, 16, 16], strides = [1, 1, 1]} : vector<4x18x16xf32> to vector<4x16x16xf32>
    %21 = arith.addf %19, %20 : vector<4x16x16xf32>
    %22 = vector.extract_strided_slice %18 {offsets = [0, 2, 0], sizes = [4, 16, 16], strides = [1, 1, 1]} : vector<4x18x16xf32> to vector<4x16x16xf32>
    %23 = arith.addf %21, %22 : vector<4x16x16xf32>
    %cst = arith.constant 0.111111112 : f32
    %24 = vector.broadcast %cst : f32 to vector<4x16x16xf32>
    %25 = arith.mulf %23, %24 : vector<4x16x16xf32>
    %26 = vector.extract_strided_slice %13 {offsets = [0, 0, 0], sizes = [4, 18, 16], strides = [1, 1, 1]} : vector<4x18x18xf32> to vector<4x18x16xf32>
    %27 = vector.extract_strided_slice %13 {offsets = [0, 0, 1], sizes = [4, 18, 16], strides = [1, 1, 1]} : vector<4x18x18xf32> to vector<4x18x16xf32>
    %28 = arith.addf %26, %27 : vector<4x18x16xf32>
    %29 = vector.extract_strided_slice %13 {offsets = [0, 0, 2], sizes = [4, 18, 16], strides = [1, 1, 1]} : vector<4x18x18xf32> to vector<4x18x16xf32>
    %30 = arith.addf %28, %29 : vector<4x18x16xf32>
    %31 = vector.extract_strided_slice %30 {offsets = [0, 0, 0], sizes = [4, 16, 16], strides = [1, 1, 1]} : vector<4x18x16xf32> to vector<4x16x16xf32>
    %32 = vector.extract_strided_slice %30 {offsets = [0, 1, 0], sizes = [4, 16, 16], strides = [1, 1, 1]} : vector<4x18x16xf32> to vector<4x16x16xf32>
    %33 = arith.addf %31, %32 : vector<4x16x16xf32>
    %34 = vector.extract_strided_slice %30 {offsets = [0, 2, 0], sizes = [4, 16, 16], strides = [1, 1, 1]} : vector<4x18x16xf32> to vector<4x16x16xf32>
    %35 = arith.addf %33, %34 : vector<4x16x16xf32>
    %cst_5 = arith.constant 0.111111112 : f32
    %36 = vector.broadcast %cst_5 : f32 to vector<4x16x16xf32>
    %37 = arith.mulf %35, %36 : vector<4x16x16xf32>
    %38 = arith.mulf %7, %7 : vector<4x18x18xf32>
    %39 = vector.extract_strided_slice %38 {offsets = [0, 0, 0], sizes = [4, 18, 16], strides = [1, 1, 1]} : vector<4x18x18xf32> to vector<4x18x16xf32>
    %40 = vector.extract_strided_slice %38 {offsets = [0, 0, 1], sizes = [4, 18, 16], strides = [1, 1, 1]} : vector<4x18x18xf32> to vector<4x18x16xf32>
    %41 = arith.addf %39, %40 : vector<4x18x16xf32>
    %42 = vector.extract_strided_slice %38 {offsets = [0, 0, 2], sizes = [4, 18, 16], strides = [1, 1, 1]} : vector<4x18x18xf32> to vector<4x18x16xf32>
    %43 = arith.addf %41, %42 : vector<4x18x16xf32>
    %44 = vector.extract_strided_slice %43 {offsets = [0, 0, 0], sizes = [4, 16, 16], strides = [1, 1, 1]} : vector<4x18x16xf32> to vector<4x16x16xf32>
    %45 = vector.extract_strided_slice %43 {offsets = [0, 1, 0], sizes = [4, 16, 16], strides = [1, 1, 1]} : vector<4x18x16xf32> to vector<4x16x16xf32>
    %46 = arith.addf %44, %45 : vector<4x16x16xf32>
    %47 = vector.extract_strided_slice %43 {offsets = [0, 2, 0], sizes = [4, 16, 16], strides = [1, 1, 1]} : vector<4x18x16xf32> to vector<4x16x16xf32>
    %48 = arith.addf %46, %47 : vector<4x16x16xf32>
    %cst_6 = arith.constant 0.111111112 : f32
    %49 = vector.broadcast %cst_6 : f32 to vector<4x16x16xf32>
    %50 = arith.mulf %48, %49 : vector<4x16x16xf32>
    %51 = arith.mulf %25, %25 : vector<4x16x16xf32>
    %52 = arith.subf %50, %51 : vector<4x16x16xf32>
    %53 = arith.mulf %13, %13 : vector<4x18x18xf32>
    %54 = vector.extract_strided_slice %53 {offsets = [0, 0, 0], sizes = [4, 18, 16], strides = [1, 1, 1]} : vector<4x18x18xf32> to vector<4x18x16xf32>
    %55 = vector.extract_strided_slice %53 {offsets = [0, 0, 1], sizes = [4, 18, 16], strides = [1, 1, 1]} : vector<4x18x18xf32> to vector<4x18x16xf32>
    %56 = arith.addf %54, %55 : vector<4x18x16xf32>
    %57 = vector.extract_strided_slice %53 {offsets = [0, 0, 2], sizes = [4, 18, 16], strides = [1, 1, 1]} : vector<4x18x18xf32> to vector<4x18x16xf32>
    %58 = arith.addf %56, %57 : vector<4x18x16xf32>
    %59 = vector.extract_strided_slice %58 {offsets = [0, 0, 0], sizes = [4, 16, 16], strides = [1, 1, 1]} : vector<4x18x16xf32> to vector<4x16x16xf32>
    %60 = vector.extract_strided_slice %58 {offsets = [0, 1, 0], sizes = [4, 16, 16], strides = [1, 1, 1]} : vector<4x18x16xf32> to vector<4x16x16xf32>
    %61 = arith.addf %59, %60 : vector<4x16x16xf32>
    %62 = vector.extract_strided_slice %58 {offsets = [0, 2, 0], sizes = [4, 16, 16], strides = [1, 1, 1]} : vector<4x18x16xf32> to vector<4x16x16xf32>
    %63 = arith.addf %61, %62 : vector<4x16x16xf32>
    %cst_7 = arith.constant 0.111111112 : f32
    %64 = vector.broadcast %cst_7 : f32 to vector<4x16x16xf32>
    %65 = arith.mulf %63, %64 : vector<4x16x16xf32>
    %66 = arith.mulf %37, %37 : vector<4x16x16xf32>
    %67 = arith.subf %65, %66 : vector<4x16x16xf32>
    %68 = arith.mulf %7, %13 : vector<4x18x18xf32>
    %69 = vector.extract_strided_slice %68 {offsets = [0, 0, 0], sizes = [4, 18, 16], strides = [1, 1, 1]} : vector<4x18x18xf32> to vector<4x18x16xf32>
    %70 = vector.extract_strided_slice %68 {offsets = [0, 0, 1], sizes = [4, 18, 16], strides = [1, 1, 1]} : vector<4x18x18xf32> to vector<4x18x16xf32>
    %71 = arith.addf %69, %70 : vector<4x18x16xf32>
    %72 = vector.extract_strided_slice %68 {offsets = [0, 0, 2], sizes = [4, 18, 16], strides = [1, 1, 1]} : vector<4x18x18xf32> to vector<4x18x16xf32>
    %73 = arith.addf %71, %72 : vector<4x18x16xf32>
    %74 = vector.extract_strided_slice %73 {offsets = [0, 0, 0], sizes = [4, 16, 16], strides = [1, 1, 1]} : vector<4x18x16xf32> to vector<4x16x16xf32>
    %75 = vector.extract_strided_slice %73 {offsets = [0, 1, 0], sizes = [4, 16, 16], strides = [1, 1, 1]} : vector<4x18x16xf32> to vector<4x16x16xf32>
    %76 = arith.addf %74, %75 : vector<4x16x16xf32>
    %77 = vector.extract_strided_slice %73 {offsets = [0, 2, 0], sizes = [4, 16, 16], strides = [1, 1, 1]} : vector<4x18x16xf32> to vector<4x16x16xf32>
    %78 = arith.addf %76, %77 : vector<4x16x16xf32>
    %cst_8 = arith.constant 0.111111112 : f32
    %79 = vector.broadcast %cst_8 : f32 to vector<4x16x16xf32>
    %80 = arith.mulf %78, %79 : vector<4x16x16xf32>
    %81 = arith.mulf %25, %37 : vector<4x16x16xf32>
    %82 = arith.subf %80, %81 : vector<4x16x16xf32>
    %cst_9 = arith.constant 2.000000e+00 : f32
    %83 = vector.broadcast %cst_9 : f32 to vector<4x16x16xf32>
    %84 = arith.mulf %83, %25 : vector<4x16x16xf32>
    %85 = arith.mulf %84, %37 : vector<4x16x16xf32>
    %cst_10 = arith.constant 9.99999974E-5 : f32
    %86 = vector.broadcast %cst_10 : f32 to vector<4x16x16xf32>
    %87 = arith.addf %85, %86 : vector<4x16x16xf32>
    %cst_11 = arith.constant 2.000000e+00 : f32
    %88 = vector.broadcast %cst_11 : f32 to vector<4x16x16xf32>
    %89 = arith.mulf %88, %82 : vector<4x16x16xf32>
    %cst_12 = arith.constant 8.99999984E-4 : f32
    %90 = vector.broadcast %cst_12 : f32 to vector<4x16x16xf32>
    %91 = arith.addf %89, %90 : vector<4x16x16xf32>
    %92 = arith.mulf %87, %91 : vector<4x16x16xf32>
    %93 = arith.mulf %25, %25 : vector<4x16x16xf32>
    %94 = arith.mulf %37, %37 : vector<4x16x16xf32>
    %95 = arith.addf %93, %94 : vector<4x16x16xf32>
    %cst_13 = arith.constant 9.99999974E-5 : f32
    %96 = vector.broadcast %cst_13 : f32 to vector<4x16x16xf32>
    %97 = arith.addf %95, %96 : vector<4x16x16xf32>
    %98 = arith.addf %52, %67 : vector<4x16x16xf32>
    %cst_14 = arith.constant 8.99999984E-4 : f32
    %99 = vector.broadcast %cst_14 : f32 to vector<4x16x16xf32>
    %100 = arith.addf %98, %99 : vector<4x16x16xf32>
    %101 = arith.mulf %97, %100 : vector<4x16x16xf32>
    %102 = tpu.reciprocal %101 {approx = true} : vector<4x16x16xf32> -> vector<4x16x16xf32>
    %103 = arith.mulf %101, %102 : vector<4x16x16xf32>
    %cst_15 = arith.constant 2.000000e+00 : f32
    %104 = vector.broadcast %cst_15 : f32 to vector<4x16x16xf32>
    %105 = arith.subf %104, %103 : vector<4x16x16xf32>
    %106 = arith.mulf %102, %105 : vector<4x16x16xf32>
    %107 = arith.mulf %101, %106 : vector<4x16x16xf32>
    %cst_16 = arith.constant 2.000000e+00 : f32
    %108 = vector.broadcast %cst_16 : f32 to vector<4x16x16xf32>
    %109 = arith.subf %108, %107 : vector<4x16x16xf32>
    %110 = arith.mulf %106, %109 : vector<4x16x16xf32>
    %111 = arith.mulf %92, %110 : vector<4x16x16xf32>
    %cst_17 = arith.constant 1.000000e+00 : f32
    %112 = vector.broadcast %cst_17 : f32 to vector<4x16x16xf32>
    %113 = arith.subf %112, %111 : vector<4x16x16xf32>
    %cst_18 = arith.constant 5.000000e-01 : f32
    %114 = vector.broadcast %cst_18 : f32 to vector<4x16x16xf32>
    %115 = arith.mulf %113, %114 : vector<4x16x16xf32>
    %cst_19 = arith.constant 0.000000e+00 : f32
    %cst_20 = arith.constant 1.000000e+00 : f32
    %116 = vector.broadcast %cst_19 : f32 to vector<4x16x16xf32>
    %117 = arith.maximumf %116, %115 : vector<4x16x16xf32>
    %118 = vector.broadcast %cst_20 : f32 to vector<4x16x16xf32>
    %119 = arith.minimumf %118, %117 : vector<4x16x16xf32>
    %c0_21 = arith.constant 0 : index
    %c0_22 = arith.constant 0 : index
    %c0_23 = arith.constant 0 : index
    %120 = vector.load %arg3[%c0_21, %c0_22, %c0_23] : memref<4x16x16xf32, #tpu.memory_space<vmem>>, vector<4x16x16xf32>
    tpu.vector_store %arg3[%c0_21, %c0_22, %c0_23], %119 {strides = array<i32>} : memref<4x16x16xf32, #tpu.memory_space<vmem>>, vector<4x16x16xf32>,
    return
  }
  func.func @transform_0(%arg0: i32) -> (i32, i32, i32) {
    %c0_i32 = arith.constant 0 : i32
    %c0_i32_0 = arith.constant 0 : i32
    %c0_i32_1 = arith.constant 0 : i32
    return %arg0, %c0_i32, %c0_i32_0 : i32, i32, i32
  }
  func.func @transform_1(%arg0: i32) -> (i32, i32, i32) {
    %c0_i32 = arith.constant 0 : i32
    %c0_i32_0 = arith.constant 0 : i32
    %c0_i32_1 = arith.constant 0 : i32
    return %arg0, %c0_i32, %c0_i32_0 : i32, i32, i32
  }
  func.func @transform_2(%arg0: i32) -> (i32, i32, i32) {
    %c0_i32 = arith.constant 0 : i32
    %c0_i32_0 = arith.constant 0 : i32
    %c0_i32_1 = arith.constant 0 : i32
    return %arg0, %c0_i32, %c0_i32_0 : i32, i32, i32
  }
}

</mosaic_0001>

<bundles_post_ra>
// kernel: tpu_custom_call.1
= control target key start
LH: loop header
LB: loop body
LE: loop exit
PB: predicated region body
PF: predicated region fallthrough
CT: control target
= control target key end

     0   :  { %7 = vsyncpa [#allocation3], 0  ;;  %s3676_s0 = inlined_call_operand.hbm [shape: f32[8,16,16], index: 0, kind: input, shape index: {}]   ;;  %s3677_s1 = inlined_call_operand.hbm [shape: f32[8,16,16], index: 1, kind: input, shape index: {}]   ;;  %s3678_s2 = inlined_call_operand.hbm [shape: f32[8,16,16], index: 2, kind: output, shape index: {}]  }
   0x1   :  { %9 = vsyncpa [#allocation3 + $0x1], 0 }
   0x2   :  { %10 = vsyncpa [#allocation6], 0 }
   0x3   :  { %12 = vsyncpa [#allocation6 + $0x1], 0 }
   0x4   :  { %13 = vsyncpa [#allocation4], 0 }
   0x5   :  { %15 = vsyncpa [#allocation4 + $0x1], 0  ;;  %s2166_s9 = smov 0   ;;  %s2168_s10 = smov 0  }
   0x6   :  { %s2170_s11 = smov 0   ;;  %s2172_s12 = smov 0  }
   0x7 LB: > { %s2187_s13 = sadd.s32 4294967295, %s2138_s12   ;;  %s1912_s14 = sadd.s32 4294967294, %s2138_s12   ;;  %s2138_s12 = sphi %s2172_s12, %s3894_s12   ;;  %s2134_s11 = sphi %s2170_s11, %s3893_s11   ;;  %s2130_s10 = sphi %s2168_s10, %s3892_s10   ;;  %s2126_s9 = sphi %s2166_s9, %s3891_s9  }
   0x8   : > { %s2191_s15 = sadd.s32 1, %s2138_s12   ;;  %s28_s16 = sadd.s32 1, %s2134_s11 }
   0x9   : > { %s25_s17 = ssub.s32 %s2138_s12, %s2191_s15  ;;  %p35_p0 = scmp.ne.s32.totalorder %s2134_s11, %s2130_s10 }
   0xa   : > { %p26_p1 = scmp.eq.s32.totalorder %s25_s17, 0  ;;  %p36_p2 = scmp.eq.s32.totalorder %s2138_s12, 0 }
   0xb   : > { %p41_p3 = scmp.ne.s32.totalorder %s2130_s10, %s2126_s9  ;;  %p42_p4 = scmp.eq.s32.totalorder %s2187_s13, 0 }
   0xc   : > { %s2203_s18 = scalar_select %p26_p1, %s2134_s11, %s28_s16  }
   0xd   : > { %p2205_p5 = por %p36_p2, %p35_p0  ;;  %p2209_p6 = por %p42_p4, %p41_p3 }
   0xe   : > { %p91_p7 = scmp.eq.s32.totalorder %s2187_s13, 1  ;;  %p97_p8 = scmp.eq.s32.totalorder %s1912_s14, 1 }
   0xf   : > { %s3745_s20 = scalar_select %p2209_p6, 1, 0 }
  0x10   : > { %p1956_p10 = scmp.lt.s32.totalorder %s2138_s12, 2  ;;  %p2216_p11 = por %p91_p7, %p35_p0 }
  0x11   : > { %p2220_p12 = por %p97_p8, %p41_p3  ;;  %s2225_s23 = sand.u32 1, %s2134_s11  }
  0x12   : > { %s3746_s21 = scalar_select %p2216_p11, 1, 0 }
  0x13   : > { %s3747_s22 = scalar_select %p2220_p12, 1, 0 }
  0x14   : > { %s1934_s24 = sshll.u32 %s2138_s12, 10  ;;  %s1915_s25 = sshll.u32 %s2225_s23, 6 }
  0x15   : > { %s2234_s28 = scalar_lea.hbm %s3676_s0, %s1934_s24  ;;  %s121_s29 = scalar_lea.vmem [#allocation2], %s1915_s25 }
  0x16   : > { %s129_s30 = sshll.u32 %s121_s29, 4  ;;  %p2240_p13 = pnand %p1956_p10, %p2205_p5  ;;  %s2244_s30 = int_to_ptr.vmem [resolvable:$true] %s129_s30 }
  0x17   : > { %s118_s4 = scalar_lea.sflag [#allocation3], %s2225_s23  ;;  %s2014_s5 = scalar_lea.hbm %s2234_s28, 1024 }
  0x18   : > { %p2015_p0 = scmp.ne.s32.totalorder %s2234_s28, %s2014_s5  ;;  %p2016_p1 = pneg %p2240_p13 }
  0x19   : > { %s2019_s8 = scalar_lea.hbm %s3676_s0, 2048  ;;  %p2020_p4 = scmp.lt.s32.totalorder %s2234_s28, %s3676_s0 }
  0x1a   : > { %p2017_p2 = pnand %p2016_p1, %p2015_p0  ;;  %p2021_p5 = scmp.lt.s32.totalorder %s2019_s8, %s2014_s5 }
  0x1c   : > { %p2018_p3 = pneg %p2017_p2  ;;  %p2022_p7 = por %p2021_p5, %p2020_p4 }
  0x1e   : > { %p2023_p8 = pnand %p2022_p7, %p2018_p3 }
  0x20   : > { %2026 = shalt.err (!%p2023_p8)
}
  0x21   : > { %s2027_s17 = scalar_lea.vmem %s2244_s30, 1024  ;;  %s2140_s19 = smov [#allocation2]  }
  0x22   : > { %p2028_p10 = scmp.ne.s32.totalorder %s2244_s30, %s2027_s17  ;;  %s2032_s26 = sshll.u32 %s2140_s19, 4  ;;  %s2033_s26 = int_to_ptr.vmem [resolvable:$false] %s2032_s26 }
  0x23   : > { %s2034_s27 = scalar_lea.vmem %s2033_s26, 2048  ;;  %p2035_p9 = scmp.lt.s32.totalorder %s2244_s30, %s2033_s26 }
  0x24   : > { %p2030_p0 = pnand %p2028_p10, %p2016_p1  ;;  %p2036_p12 = scmp.lt.s32.totalorder %s2034_s27, %s2027_s17 }
  0x26   : > { %p2031_p2 = pneg %p2030_p0  ;;  %p2037_p11 = por %p2036_p12, %p2035_p9 }
  0x28   : > { %p2038_p4 = pnand %p2037_p11, %p2031_p2 }
  0x2a   : > { %2041 = shalt.err (!%p2038_p4)
}
  0x2b   : > { %s2141_s29 = smov 128   ;;  %s2142_s5 = smov 8  }
  0x2c   : > { %1948 = dma.hbm_to_vmem [thread:$0]  (!%p2240_p13), %s2234_s28, 1024, %s2244_s30, %s118_s4, %s2141_s29, %s2141_s29, %s2142_s5  }
  0x2d   : > { %p1923_p9 = scmp.ge.s32.totalorder %s2138_s12, 1  ;;  %p159_p11 = scmp.lt.s32.totalorder %s2138_s12, 3 }
  0x2e   : > { %s2287_s14 = scalar_lea.hbm %s3677_s1, %s1934_s24  ;;  %s143_s16 = scalar_lea.vmem [#allocation5], %s1915_s25 }
  0x2f   : > { %p2278_p12 = pnand %p1923_p9, %p159_p11  ;;  %s151_s17 = sshll.u32 %s143_s16, 4  ;;  %s2291_s17 = int_to_ptr.vmem [resolvable:$true] %s151_s17 }
  0x30   : > { %s140_s28 = scalar_lea.sflag [#allocation6], %s2225_s23  ;;  %s2042_s30 = scalar_lea.hbm %s2287_s14, 1024 }
  0x31   : > { %p2043_p3 = scmp.ne.s32.totalorder %s2287_s14, %s2042_s30  ;;  %s2047_s24 = scalar_lea.hbm %s3677_s1, 2048 }
  0x32   : > { %p2048_p8 = scmp.lt.s32.totalorder %s2287_s14, %s3677_s1  ;;  %p2049_p10 = scmp.lt.s32.totalorder %s2047_s24, %s2042_s30 }
  0x33   : > { %p2045_p5 = pnand %p2043_p3, %p2016_p1 }
  0x34   : > { %p2050_p0 = por %p2049_p10, %p2048_p8 }
  0x35   : > { %p2046_p7 = pneg %p2045_p5 }
  0x37   : > { %p2051_p2 = pnand %p2050_p0, %p2046_p7 }
  0x39   : > { %2054 = shalt.err (!%p2051_p2)
}
  0x3a   : > { %s2055_s23 = scalar_lea.vmem %s2291_s17, 1024  ;;  %s2143_s25 = smov [#allocation5]  }
  0x3b   : > { %p2056_p4 = scmp.ne.s32.totalorder %s2291_s17, %s2055_s23  ;;  %s2060_s7 = sshll.u32 %s2143_s25, 4  ;;  %s2061_s7 = int_to_ptr.vmem [resolvable:$false] %s2060_s7 }
  0x3c   : > { %s2062_s8 = scalar_lea.vmem %s2061_s7, 2048  ;;  %p2063_p3 = scmp.lt.s32.totalorder %s2291_s17, %s2061_s7 }
  0x3d   : > { %p2058_p9 = pnand %p2056_p4, %p2016_p1  ;;  %p2064_p5 = scmp.lt.s32.totalorder %s2062_s8, %s2055_s23 }
  0x3f   : > { %p2059_p11 = pneg %p2058_p9  ;;  %p2065_p6 = por %p2064_p5, %p2063_p3 }
  0x41   : > { %p2066_p8 = pnand %p2065_p6, %p2059_p11 }
  0x43   : > { %2069 = shalt.err (!%p2066_p8)
}
  0x44   : > { %1951 = dma.hbm_to_vmem [thread:$0]  (!%p2240_p13), %s2287_s14, 1024, %s2291_s17, %s140_s28, %s2141_s29, %s2141_s29, %s2142_s5  }
  0x45   : > { %163 = sbr.rel (%p2278_p12) target bundleno = 635 (0x27b), region = 28 }
  0x4a   : > { %s2322_s16 = sand.u32 1, %s2130_s10   ;;  %p3750_p6 = scmp.ne.s32.totalorder %s3745_s20, 0 }
  0x4b   : > { %s2325_s30 = sshll.u32 %s2322_s16, 6  ;;  %s166_s4 = scalar_lea.sflag [#allocation3], %s2322_s16 }
  0x4c   : > { %s169_s3 = scalar_lea.vmem [#allocation2], %s2325_s30 }
  0x4d   : > { %2113 = dma.done.wait (%p3750_p6), %s166_s4, 1024  }
  0x4e   : > { %2115 = vsyncadd (%p3750_p6), %s166_s4, 4294966272  ;;  %s175_s29 = scalar_lea.sflag [#allocation6], %s2322_s16  ;;  %s2335_s5 = scalar_lea.vmem [#allocation5], %s2325_s30 }
  0x4f   : > { %2117 = dma.done.wait (%p3750_p6), %s175_s29, 1024  }
  0x50   : > { %2119 = vsyncadd (%p3750_p6), %s175_s29, 4294966272  ;;  %v209_v0 = vld [vmem:[%s169_s3 + $0x10] sm:$0xff]  ;;  %v207_v1 = vld [vmem:[%s169_s3] sm:$0xff]  ;;  %s2144_s6 = smov 127   ;;  %s2145_s20 = smov 1   ;;  %vm303_vm0 = vcmask 7168  }
  0x51   : > { %235 = vrot.lane.b32.xlu1 %v209_v0, %s2144_s6  ;;  %231 = vrot.lane.b32.xlu0 %v207_v1, %s2144_s6  ;;  %v210_v2 = vld [vmem:[%s169_s3 + $0x18] sm:$0xff]  ;;  %v208_v3 = vld [vmem:[%s169_s3 + $0x8] sm:$0xff]  ;;  %s2146_s14 = smov 3   ;;  %vm312_vm1 = vcmask 138240   ;;  %vm337_vm2 = vcmask 1040384   ;;  %s2147_s17 = smov 126  }
  0x52   : > { %v212_v4 = vld [vmem:[%s169_s3 + $0x28] sm:$0xff]  ;;  %v211_v5 = vld [vmem:[%s169_s3 + $0x20] sm:$0xff]  ;;  %v214_v6 = vld [vmem:[%s169_s3 + $0x38] sm:$0xff]  ;;  %vm646_vm3 = vcmask 1046528   ;;  %vm683_vm4 = vcmask 1045504   ;;  %vm1792_vm5 = vcmask 130048  }
  0x53   : > { %v213_v7 = vld [vmem:[%s169_s3 + $0x30] sm:$0xff]  ;;  %v216_v8 = vld [vmem:[%s2335_s5 + $0x8] sm:$0xff]  ;;  %v215_v9 = vld [vmem:[%s2335_s5] sm:$0xff]  ;;  %s3588_s28 = scalar_lea.vmem [#allocation7], %s2325_s30  ;;  %s1938_s19 = sshll.u32 %s2187_s13, 10 }
  0x54   : > { %v218_v10 = vld [vmem:[%s2335_s5 + $0x18] sm:$0xff]  ;;  %v217_v11 = vld [vmem:[%s2335_s5 + $0x10] sm:$0xff]  ;;  %v220_v12 = vld [vmem:[%s2335_s5 + $0x28] sm:$0xff]  ;;  %s1816_s24 = sshll.u32 %s3588_s28, 4  ;;  %s3627_s23 = scalar_lea.hbm %s3678_s2, %s1938_s19  ;;  %s3629_s24 = int_to_ptr.vmem [resolvable:$true] %s1816_s24 }
  0x55   : > { %237 = vrot.lane.b32.xlu1 %v210_v2, %s2144_s6  ;;  %233 = vrot.lane.b32.xlu0 %v208_v3, %s2144_s6  ;;  %v219_v13 = vld [vmem:[%s2335_s5 + $0x20] sm:$0xff]  ;;  %v222_v14 = vld [vmem:[%s2335_s5 + $0x38] sm:$0xff]  ;;  %s1802_s13 = scalar_lea.sflag [#allocation4], %s2322_s16  ;;  %s2070_s25 = scalar_lea.vmem %s3629_s24, 1024 }
  0x56   : > { %v221_v15 = vld [vmem:[%s2335_s5 + $0x30] sm:$0xff]  ;;  %p2071_p13 = scmp.ne.s32.totalorder %s3629_s24, %s2070_s25  ;;  %p3888_p1 = scmp.ne.s32.totalorder %s3746_s21, 0 }
  0x57   : > { %s2148_s7 = smov [#allocation7]  }
  0x58   : > { %p2072_p12 = pnand %p2071_p13, %p3888_p1  ;;  %s2074_s8 = sshll.u32 %s2148_s7, 4  ;;  %s2075_s8 = int_to_ptr.vmem [resolvable:$false] %s2074_s8 }
  0x59   : > { %241 = vrot.lane.b32.xlu1 %v212_v4, %s2144_s6  ;;  %239 = vrot.lane.b32.xlu0 %v211_v5, %s2144_s6  ;;  %s2076_s30 = scalar_lea.vmem %s2075_s8, 2048  ;;  %p2077_p10 = scmp.lt.s32.totalorder %s3629_s24, %s2075_s8 }
  0x5a   : > { %p2073_p7 = pneg %p2072_p12  ;;  %p2078_p0 = scmp.lt.s32.totalorder %s2076_s30, %s2070_s25 }
  0x5c   : > { %p2079_p2 = por %p2078_p0, %p2077_p10 }
  0x5d   : > { %245 = vrot.lane.b32.xlu1 %v214_v6, %s2144_s6  ;;  %243 = vrot.lane.b32.xlu0 %v213_v7, %s2144_s6 }
  0x5e   : > { %p2080_p4 = pnand %p2079_p2, %p2073_p7 }
  0x61   : > { %257 = vrot.lane.b32.xlu1 %v208_v3, %s2145_s20  ;;  %255 = vrot.lane.b32.xlu0 %v207_v1, %s2145_s20 }
  0x65   : > { %261 = vrot.lane.b32.xlu1 %v210_v2, %s2145_s20  ;;  %259 = vrot.lane.b32.xlu0 %v209_v0, %s2145_s20 }
  0x69   : > { %265 = vrot.lane.b32.xlu1 %v212_v4, %s2145_s20  ;;  %263 = vrot.lane.b32.xlu0 %v211_v5, %s2145_s20 }
  0x6d   : > { %269 = vrot.lane.b32.xlu1 %v214_v6, %s2145_s20  ;;  %267 = vrot.lane.b32.xlu0 %v213_v7, %s2145_s20 }
  0x71   : > { %281 = vrot.lane.b32.xlu1 %v208_v3, %s2146_s14  ;;  %279 = vrot.lane.b32.xlu0 %v207_v1, %s2146_s14 }
  0x75   : > { %285 = vrot.lane.b32.xlu1 %v210_v2, %s2146_s14  ;;  %283 = vrot.lane.b32.xlu0 %v209_v0, %s2146_s14 }
  0x79   : > { %289 = vrot.lane.b32.xlu1 %v212_v4, %s2146_s14  ;;  %287 = vrot.lane.b32.xlu0 %v211_v5, %s2146_s14 }
  0x7d   : > { %293 = vrot.lane.b32.xlu1 %v214_v6, %s2146_s14  ;;  %291 = vrot.lane.b32.xlu0 %v213_v7, %s2146_s14 }
  0x81   : > { %388 = vrot.lane.b32.xlu1 %v216_v8, %s2144_s6  ;;  %386 = vrot.lane.b32.xlu0 %v215_v9, %s2144_s6 }
  0x85   : > { %392 = vrot.lane.b32.xlu1 %v218_v10, %s2144_s6  ;;  %390 = vrot.lane.b32.xlu0 %v217_v11, %s2144_s6 }
  0x89   : > { %396 = vrot.lane.b32.xlu1 %v220_v12, %s2144_s6  ;;  %394 = vrot.lane.b32.xlu0 %v219_v13, %s2144_s6 }
  0x8d   : > { %400 = vrot.lane.b32.xlu1 %v222_v14, %s2144_s6  ;;  %398 = vrot.lane.b32.xlu0 %v221_v15, %s2144_s6 }
  0x91   : > { %412 = vrot.lane.b32.xlu1 %v216_v8, %s2145_s20  ;;  %410 = vrot.lane.b32.xlu0 %v215_v9, %s2145_s20 }
  0x95   : > { %416 = vrot.lane.b32.xlu1 %v218_v10, %s2145_s20  ;;  %414 = vrot.lane.b32.xlu0 %v217_v11, %s2145_s20 }
  0x99   : > { %420 = vrot.lane.b32.xlu1 %v220_v12, %s2145_s20  ;;  %418 = vrot.lane.b32.xlu0 %v219_v13, %s2145_s20 }
  0x9d   : > { %424 = vrot.lane.b32.xlu1 %v222_v14, %s2145_s20  ;;  %422 = vrot.lane.b32.xlu0 %v221_v15, %s2145_s20 }
  0xa1   : > { %436 = vrot.lane.b32.xlu1 %v216_v8, %s2146_s14  ;;  %434 = vrot.lane.b32.xlu0 %v215_v9, %s2146_s14 }
  0xa5   : > { %440 = vrot.lane.b32.xlu1 %v218_v10, %s2146_s14  ;;  %438 = vrot.lane.b32.xlu0 %v217_v11, %s2146_s14 }
  0xa9   : > { %444 = vrot.lane.b32.xlu1 %v220_v12, %s2146_s14  ;;  %442 = vrot.lane.b32.xlu0 %v219_v13, %s2146_s14 }
  0xad   : > { %448 = vrot.lane.b32.xlu1 %v222_v14, %s2146_s14  ;;  %446 = vrot.lane.b32.xlu0 %v221_v15, %s2146_s14 }
  0xc3   : > { %v236_v16 = vpop.permute.xlu1 %235  ;;  %v232_v17 = vpop.permute.xlu0 %231 }
  0xc7   : > { %v238_v18 = vpop.permute.xlu1 %237  ;;  %v234_v19 = vpop.permute.xlu0 %233 }
  0xcb   : > { %v242_v20 = vpop.permute.xlu1 %241  ;;  %v240_v21 = vpop.permute.xlu0 %239 }
  0xcf   : > { %v246_v22 = vpop.permute.xlu1 %245  ;;  %v244_v23 = vpop.permute.xlu0 %243 }
  0xd3   : > { %v258_v24 = vpop.permute.xlu1 %257  ;;  %v256_v25 = vpop.permute.xlu0 %255 }
  0xd4   : > { %v305_v32 = vsel %vm303_vm0, %v234_v19, %v258_v24  ;;  %v304_v33 = vsel %vm303_vm0, %v232_v17, %v256_v25 }
  0xd7   : > { %v262_v26 = vpop.permute.xlu1 %261  ;;  %v260_v27 = vpop.permute.xlu0 %259 }
  0xd8   : > { %v307_v41 = vsel %vm303_vm0, %v238_v18, %v262_v26  ;;  %v306_v42 = vsel %vm303_vm0, %v236_v16, %v260_v27 }
  0xdb   : > { %v266_v28 = vpop.permute.xlu1 %265  ;;  %v264_v29 = vpop.permute.xlu0 %263 }
  0xdc   : > { %v309_v52 = vsel %vm303_vm0, %v242_v20, %v266_v28  ;;  %v308_v54 = vsel %vm303_vm0, %v240_v21, %v264_v29 }
  0xdf   : > { %v270_v30 = vpop.permute.xlu1 %269  ;;  %v268_v31 = vpop.permute.xlu0 %267 }
  0xe0   : > { %v310_v62 = vsel %vm303_vm0, %v244_v23, %v268_v31  ;;  %v311_v7 = vsel %vm303_vm0, %v246_v22, %v270_v30 }
  0xe3   : > { %v282_v34 = vpop.permute.xlu1 %281  ;;  %v280_v35 = vpop.permute.xlu0 %279 }
  0xe4   : > { %v314_v36 = vsel %vm312_vm1, %v305_v32, %v282_v34  ;;  %v313_v37 = vsel %vm312_vm1, %v304_v33, %v280_v35 }
  0xe5   : > { %v339_v38 = vrot.slane %v314_v36, 7  ;;  %v325_v39 = vrot.slane %v313_v37, 1  ;;  %v338_v40 = vrot.slane %v313_v37, 7  ;;  %v362_v43 = vrot.slane %v314_v36, 5 }
  0xe7   : > { %v286_v44 = vpop.permute.xlu1 %285  ;;  %v284_v45 = vpop.permute.xlu0 %283  ;;  %v2404_v46 = vsel %vm337_vm2, %v338_v40, %v339_v38  ;;  %v2407_v47 = vsel %vm337_vm2, %v325_v39, %v338_v40  ;;  %v2418_v58 = vsel %vm337_vm2, %v339_v38, %v362_v43 }
  0xe8   : > { %v316_v48 = vsel %vm312_vm1, %v307_v41, %v286_v44  ;;  %v315_v49 = vsel %vm312_vm1, %v306_v42, %v284_v45  ;;  %540 = vrot.lane.b32.xlu1 %v2404_v46, %s2144_s6  ;;  %538 = vrot.lane.b32.xlu0 %v2407_v47, %s2144_s6 }
  0xe9   : > { %v326_v50 = vrot.slane %v315_v49, 1  ;;  %v341_v51 = vrot.slane %v315_v49, 7  ;;  %v342_v53 = vrot.slane %v316_v48, 7  ;;  %v363_v55 = vrot.slane %v316_v48, 5 }
  0xeb   : > { %v290_v56 = vpop.permute.xlu1 %289  ;;  %v288_v57 = vpop.permute.xlu0 %287  ;;  %v2421_v59 = vsel %vm337_vm2, %v326_v50, %v341_v51  ;;  %v2431_v63 = vsel %vm337_vm2, %v341_v51, %v342_v53  ;;  %v2434_v5 = vsel %vm337_vm2, %v342_v53, %v363_v55 }
  0xec   : > { %v318_v60 = vsel %vm312_vm1, %v309_v52, %v290_v56  ;;  %v317_v61 = vsel %vm312_vm1, %v308_v54, %v288_v57  ;;  %542 = vrot.lane.b32.xlu0 %v2418_v58, %s2144_s6  ;;  %544 = vrot.lane.b32.xlu1 %v2421_v59, %s2144_s6  ;;  %3751 = vst [vmem:[#allocation11_spill] sm:$0xff] %v2434_v5 }
  0xed   : > { %v345_v0 = vrot.slane %v318_v60, 7  ;;  %v327_v1 = vrot.slane %v317_v61, 1  ;;  %v344_v2 = vrot.slane %v317_v61, 7  ;;  %v364_v8 = vrot.slane %v318_v60, 5 }
  0xef   : > { %v294_v3 = vpop.permute.xlu1 %293  ;;  %v292_v4 = vpop.permute.xlu0 %291  ;;  %v2443_v13 = vsel %vm337_vm2, %v344_v2, %v345_v0  ;;  %v2446_v14 = vsel %vm337_vm2, %v327_v1, %v344_v2  ;;  %v2454_v20 = vsel %vm337_vm2, %v345_v0, %v364_v8 }
  0xf0   : > { %v319_v6 = vsel %vm312_vm1, %v310_v62, %v292_v4  ;;  %546 = vrot.lane.b32.xlu0 %v2431_v63, %s2144_s6  ;;  %548 = vrot.lane.b32.xlu1 %v2434_v5, %s2144_s6  ;;  %v320_v15 = vsel %vm312_vm1, %v311_v7, %v294_v3 }
  0xf1   : > { %v328_v9 = vrot.slane %v319_v6, 1  ;;  %v347_v10 = vrot.slane %v319_v6, 7  ;;  %v348_v16 = vrot.slane %v320_v15, 7  ;;  %v365_v17 = vrot.slane %v320_v15, 5 }
  0xf3   : > { %v389_v11 = vpop.permute.xlu1 %388  ;;  %v387_v12 = vpop.permute.xlu0 %386  ;;  %v2457_v21 = vsel %vm337_vm2, %v328_v9, %v347_v10  ;;  %v2464_v24 = vsel %vm337_vm2, %v347_v10, %v348_v16  ;;  %v2467_v25 = vsel %vm337_vm2, %v348_v16, %v365_v17 }
  0xf4   : > { %552 = vrot.lane.b32.xlu1 %v2443_v13, %s2144_s6  ;;  %550 = vrot.lane.b32.xlu0 %v2446_v14, %s2144_s6 }
  0xf7   : > { %v393_v18 = vpop.permute.xlu1 %392  ;;  %v391_v19 = vpop.permute.xlu0 %390 }
  0xf8   : > { %554 = vrot.lane.b32.xlu0 %v2454_v20, %s2144_s6  ;;  %556 = vrot.lane.b32.xlu1 %v2457_v21, %s2144_s6 }
  0xfb   : > { %v397_v22 = vpop.permute.xlu1 %396  ;;  %v395_v23 = vpop.permute.xlu0 %394 }
  0xfc   : > { %558 = vrot.lane.b32.xlu0 %v2464_v24, %s2144_s6  ;;  %560 = vrot.lane.b32.xlu1 %v2467_v25, %s2144_s6 }
  0xff   : > { %v401_v26 = vpop.permute.xlu1 %400  ;;  %v399_v27 = vpop.permute.xlu0 %398 }
 0x100   : > { %586 = vrot.lane.b32.xlu0 %v2407_v47, %s2147_s17  ;;  %588 = vrot.lane.b32.xlu1 %v2404_v46, %s2147_s17 }
 0x103   : > { %v413_v28 = vpop.permute.xlu1 %412  ;;  %v411_v29 = vpop.permute.xlu0 %410 }
 0x104   : > { %590 = vrot.lane.b32.xlu0 %v2418_v58, %s2147_s17  ;;  %592 = vrot.lane.b32.xlu1 %v2421_v59, %s2147_s17  ;;  %v459_v36 = vsel %vm303_vm0, %v389_v11, %v413_v28  ;;  %v458_v37 = vsel %vm303_vm0, %v387_v12, %v411_v29 }
 0x107   : > { %v417_v30 = vpop.permute.xlu1 %416  ;;  %v415_v31 = vpop.permute.xlu0 %414 }
 0x108   : > { %594 = vrot.lane.b32.xlu0 %v2431_v63, %s2147_s17  ;;  %596 = vrot.lane.b32.xlu1 %v2434_v5, %s2147_s17  ;;  %v461_v45 = vsel %vm303_vm0, %v393_v18, %v417_v30  ;;  %v460_v48 = vsel %vm303_vm0, %v391_v19, %v415_v31 }
 0x10b   : > { %v421_v32 = vpop.permute.xlu1 %420  ;;  %v419_v33 = vpop.permute.xlu0 %418 }
 0x10c   : > { %598 = vrot.lane.b32.xlu0 %v2446_v14, %s2147_s17  ;;  %600 = vrot.lane.b32.xlu1 %v2443_v13, %s2147_s17  ;;  %v463_v60 = vsel %vm303_vm0, %v397_v22, %v421_v32  ;;  %v462_v61 = vsel %vm303_vm0, %v395_v23, %v419_v33 }
 0x10f   : > { %v425_v34 = vpop.permute.xlu1 %424  ;;  %v423_v35 = vpop.permute.xlu0 %422 }
 0x110   : > { %602 = vrot.lane.b32.xlu0 %v2454_v20, %s2147_s17  ;;  %604 = vrot.lane.b32.xlu1 %v2457_v21, %s2147_s17  ;;  %v465_v8 = vsel %vm303_vm0, %v401_v26, %v425_v34  ;;  %v464_v11 = vsel %vm303_vm0, %v399_v27, %v423_v35 }
 0x113   : > { %v437_v38 = vpop.permute.xlu1 %436  ;;  %v435_v39 = vpop.permute.xlu0 %434 }
 0x114   : > { %v467_v40 = vsel %vm312_vm1, %v459_v36, %v437_v38  ;;  %v466_v41 = vsel %vm312_vm1, %v458_v37, %v435_v39  ;;  %606 = vrot.lane.b32.xlu0 %v2464_v24, %s2147_s17  ;;  %608 = vrot.lane.b32.xlu1 %v2467_v25, %s2147_s17  ;;  %v2599_v36 = vmul.f32 %v2407_v47, %v2407_v47 }
 0x115   : > { %v491_v42 = vrot.slane %v467_v40, 7  ;;  %v478_v43 = vrot.slane %v466_v41, 1  ;;  %v490_v44 = vrot.slane %v466_v41, 7  ;;  %v514_v49 = vrot.slane %v467_v40, 5 }
 0x116   : > { %v2603_v37 = vmul.f32 %v2404_v46, %v2404_v46  ;;  %v2611_v38 = vmul.f32 %v2418_v58, %v2418_v58  ;;  %v2615_v39 = vmul.f32 %v2421_v59, %v2421_v59  ;;  %v2623_v40 = vmul.f32 %v2431_v63, %v2431_v63 }
 0x117   : > { %v441_v50 = vpop.permute.xlu1 %440  ;;  %v439_v51 = vpop.permute.xlu0 %438  ;;  %v2504_v52 = vsel %vm337_vm2, %v490_v44, %v491_v42  ;;  %v2507_v53 = vsel %vm337_vm2, %v478_v43, %v490_v44  ;;  %v2518_v3 = vsel %vm337_vm2, %v491_v42, %v514_v49  ;;  %v2627_v41 = vmul.f32 %v2434_v5, %v2434_v5 }
 0x118   : > { %v469_v54 = vsel %vm312_vm1, %v461_v45, %v441_v50  ;;  %v468_v55 = vsel %vm312_vm1, %v460_v48, %v439_v51  ;;  %738 = vrot.lane.b32.xlu1 %v2504_v52, %s2144_s6  ;;  %736 = vrot.lane.b32.xlu0 %v2507_v53, %s2144_s6  ;;  %3752 = vst [vmem:[#allocation12_spill] sm:$0xff] %v2611_v38  ;;  %3753 = vst [vmem:[#allocation13_spill] sm:$0xff] %v2615_v39 }
 0x119   : > { %v479_v56 = vrot.slane %v468_v55, 1  ;;  %v493_v57 = vrot.slane %v468_v55, 7  ;;  %v494_v62 = vrot.slane %v469_v54, 7  ;;  %v515_v0 = vrot.slane %v469_v54, 5  ;;  %3754 = vst [vmem:[#allocation14_spill] sm:$0xff] %v2623_v40  ;;  %3755 = vst [vmem:[#allocation15_spill] sm:$0xff] %v2627_v41 }
 0x11a   : > { %v2635_v42 = vmul.f32 %v2446_v14, %v2446_v14  ;;  %v2639_v43 = vmul.f32 %v2443_v13, %v2443_v13  ;;  %v2647_v44 = vmul.f32 %v2454_v20, %v2454_v20  ;;  %v2651_v45 = vmul.f32 %v2457_v21, %v2457_v21 }
 0x11b   : > { %v445_v1 = vpop.permute.xlu1 %444  ;;  %v443_v2 = vpop.permute.xlu0 %442  ;;  %v2521_v4 = vsel %vm337_vm2, %v479_v56, %v493_v57  ;;  %v2532_v17 = vsel %vm337_vm2, %v493_v57, %v494_v62  ;;  %v2535_v18 = vsel %vm337_vm2, %v494_v62, %v515_v0  ;;  %v2663_v50 = vmul.f32 %v2464_v24, %v2464_v24 }
 0x11c   : > { %v471_v6 = vsel %vm312_vm1, %v463_v60, %v445_v1  ;;  %v470_v7 = vsel %vm312_vm1, %v462_v61, %v443_v2  ;;  %740 = vrot.lane.b32.xlu0 %v2518_v3, %s2144_s6  ;;  %742 = vrot.lane.b32.xlu1 %v2521_v4, %s2144_s6  ;;  %3756 = vst [vmem:[#allocation16_spill] sm:$0xff] %v2635_v42  ;;  %3757 = vst [vmem:[#allocation17_spill] sm:$0xff] %v2639_v43 }
 0x11d   : > { %v497_v9 = vrot.slane %v471_v6, 7  ;;  %v496_v10 = vrot.slane %v470_v7, 7  ;;  %v480_v12 = vrot.slane %v470_v7, 1  ;;  %v516_v29 = vrot.slane %v471_v6, 5  ;;  %3758 = vst [vmem:[#allocation18_spill] sm:$0xff] %v2647_v44  ;;  %3759 = vst [vmem:[#allocation19_spill] sm:$0xff] %v2651_v45 }
 0x11e   : > { %3760 = vst [vmem:[#allocation20_spill] sm:$0xff] %v2663_v50  ;;  %v2667_v51 = vmul.f32 %v2467_v25, %v2467_v25  ;;  %v2687_v60 = vmul.f32 %v2507_v53, %v2507_v53  ;;  %v2691_v61 = vmul.f32 %v2504_v52, %v2504_v52  ;;  %v2703_v1 = vmul.f32 %v2518_v3, %v2518_v3 }
 0x11f   : > { %v449_v15 = vpop.permute.xlu1 %448  ;;  %v447_v16 = vpop.permute.xlu0 %446  ;;  %v2544_v30 = vsel %vm337_vm2, %v496_v10, %v497_v9  ;;  %v2547_v31 = vsel %vm337_vm2, %v480_v12, %v496_v10  ;;  %v2563_v35 = vsel %vm337_vm2, %v497_v9, %v516_v29  ;;  %v2707_v2 = vmul.f32 %v2521_v4, %v2521_v4 }
 0x120   : > { %v473_v19 = vsel %vm312_vm1, %v465_v8, %v449_v15  ;;  %v472_v22 = vsel %vm312_vm1, %v464_v11, %v447_v16  ;;  %744 = vrot.lane.b32.xlu0 %v2532_v17, %s2144_s6  ;;  %746 = vrot.lane.b32.xlu1 %v2535_v18, %s2144_s6  ;;  %3761 = vst [vmem:[#allocation21_spill] sm:$0xff] %v2667_v51  ;;  %3764 = vst [vmem:[#allocation24_spill] sm:$0xff] %v2687_v60 }
 0x121   : > { %v500_v23 = vrot.slane %v473_v19, 7  ;;  %v517_v26 = vrot.slane %v473_v19, 5  ;;  %v481_v27 = vrot.slane %v472_v22, 1  ;;  %v499_v28 = vrot.slane %v472_v22, 7  ;;  %3765 = vst [vmem:[#allocation25_spill] sm:$0xff] %v2691_v61  ;;  %3768 = vst [vmem:[#allocation28_spill] sm:$0xff] %v2703_v1 }
 0x122   : > { %3769 = vst [vmem:[#allocation29_spill] sm:$0xff] %v2707_v2  ;;  %v2719_v8 = vmul.f32 %v2532_v17, %v2532_v17  ;;  %v2723_v9 = vmul.f32 %v2535_v18, %v2535_v18  ;;  %v2731_v12 = vmul.f32 %v2547_v31, %v2547_v31  ;;  %v2735_v15 = vmul.f32 %v2544_v30, %v2544_v30 }
 0x123   : > { %v2550_v32 = vsel %vm337_vm2, %v481_v27, %v499_v28  ;;  %v2553_v33 = vsel %vm337_vm2, %v499_v28, %v500_v23  ;;  %v2556_v34 = vsel %vm337_vm2, %v500_v23, %v517_v26  ;;  %v2747_v22 = vmul.f32 %v2563_v35, %v2563_v35 }
 0x124   : > { %750 = vrot.lane.b32.xlu1 %v2544_v30, %s2144_s6  ;;  %748 = vrot.lane.b32.xlu0 %v2547_v31, %s2144_s6  ;;  %3771 = vst [vmem:[#allocation31_spill] sm:$0xff] %v2719_v8  ;;  %3772 = vst [vmem:[#allocation32_spill] sm:$0xff] %v2723_v9  ;;  %v2751_v23 = vmul.f32 %v2550_v32, %v2550_v32  ;;  %v2763_v28 = vmul.f32 %v2553_v33, %v2553_v33 }
 0x125   : > { %3773 = vst [vmem:[#allocation33_spill] sm:$0xff] %v2731_v12  ;;  %3774 = vst [vmem:[#allocation34_spill] sm:$0xff] %v2735_v15  ;;  %v2767_v29 = vmul.f32 %v2556_v34, %v2556_v34 }
 0x126   : > { %3775 = vst [vmem:[#allocation35_spill] sm:$0xff] %v2747_v22  ;;  %3776 = vst [vmem:[#allocation36_spill] sm:$0xff] %v2751_v23 }
 0x127   : > { %3778 = vst [vmem:[#allocation38_spill] sm:$0xff] %v2763_v28  ;;  %3779 = vst [vmem:[#allocation39_spill] sm:$0xff] %v2767_v29 }
 0x128   : > { %752 = vrot.lane.b32.xlu0 %v2563_v35, %s2144_s6  ;;  %754 = vrot.lane.b32.xlu1 %v2550_v32, %s2144_s6 }
 0x12c   : > { %756 = vrot.lane.b32.xlu0 %v2553_v33, %s2144_s6  ;;  %758 = vrot.lane.b32.xlu1 %v2556_v34, %s2144_s6 }
 0x130   : > { %784 = vrot.lane.b32.xlu0 %v2507_v53, %s2147_s17  ;;  %786 = vrot.lane.b32.xlu1 %v2504_v52, %s2147_s17 }
 0x134   : > { %788 = vrot.lane.b32.xlu0 %v2518_v3, %s2147_s17  ;;  %790 = vrot.lane.b32.xlu1 %v2521_v4, %s2147_s17 }
 0x138   : > { %792 = vrot.lane.b32.xlu0 %v2532_v17, %s2147_s17  ;;  %794 = vrot.lane.b32.xlu1 %v2535_v18, %s2147_s17 }
 0x13c   : > { %796 = vrot.lane.b32.xlu0 %v2547_v31, %s2147_s17  ;;  %798 = vrot.lane.b32.xlu1 %v2544_v30, %s2147_s17 }
 0x140   : > { %800 = vrot.lane.b32.xlu0 %v2563_v35, %s2147_s17  ;;  %802 = vrot.lane.b32.xlu1 %v2550_v32, %s2147_s17 }
 0x144   : > { %804 = vrot.lane.b32.xlu0 %v2553_v33, %s2147_s17  ;;  %806 = vrot.lane.b32.xlu1 %v2556_v34, %s2147_s17 }
 0x148   : > { %948 = vrot.lane.b32.xlu0 %v2599_v36, %s2144_s6  ;;  %950 = vrot.lane.b32.xlu1 %v2603_v37, %s2144_s6 }
 0x14c   : > { %952 = vrot.lane.b32.xlu0 %v2611_v38, %s2144_s6  ;;  %954 = vrot.lane.b32.xlu1 %v2615_v39, %s2144_s6 }
 0x150   : > { %956 = vrot.lane.b32.xlu0 %v2623_v40, %s2144_s6  ;;  %958 = vrot.lane.b32.xlu1 %v2627_v41, %s2144_s6 }
 0x154   : > { %960 = vrot.lane.b32.xlu0 %v2635_v42, %s2144_s6  ;;  %962 = vrot.lane.b32.xlu1 %v2639_v43, %s2144_s6 }
 0x158   : > { %964 = vrot.lane.b32.xlu0 %v2647_v44, %s2144_s6  ;;  %966 = vrot.lane.b32.xlu1 %v2651_v45, %s2144_s6 }
 0x15a   : > { %v2657_v48 = vpop.permute.xlu1 %540  ;;  %v2659_v49 = vpop.permute.xlu0 %538 }
 0x15c   : > { %968 = vrot.lane.b32.xlu0 %v2663_v50, %s2144_s6  ;;  %970 = vrot.lane.b32.xlu1 %v2667_v51, %s2144_s6 }
 0x15e   : > { %v2673_v54 = vpop.permute.xlu1 %544  ;;  %v2675_v55 = vpop.permute.xlu0 %542 }
 0x15f   : > { %3762 = vst [vmem:[#allocation22_spill] sm:$0xff] %v2673_v54 }
 0x160   : > { %996 = vrot.lane.b32.xlu0 %v2599_v36, %s2147_s17  ;;  %998 = vrot.lane.b32.xlu1 %v2603_v37, %s2147_s17 }
 0x162   : > { %v2681_v56 = vpop.permute.xlu1 %548  ;;  %v2683_v57 = vpop.permute.xlu0 %546 }
 0x163   : > { %3763 = vst [vmem:[#allocation23_spill] sm:$0xff] %v2681_v56 }
 0x164   : > { %1176 = vrot.lane.b32.xlu0 %v2687_v60, %s2144_s6  ;;  %1178 = vrot.lane.b32.xlu1 %v2691_v61, %s2144_s6 }
 0x166   : > { %v2697_v62 = vpop.permute.xlu1 %552  ;;  %v2699_v0 = vpop.permute.xlu0 %550 }
 0x167   : > { %3766 = vst [vmem:[#allocation26_spill] sm:$0xff] %v2697_v62  ;;  %3767 = vst [vmem:[#allocation27_spill] sm:$0xff] %v2699_v0 }
 0x168   : > { %1180 = vrot.lane.b32.xlu0 %v2703_v1, %s2144_s6  ;;  %1182 = vrot.lane.b32.xlu1 %v2707_v2, %s2144_s6 }
 0x16a   : > { %v2713_v6 = vpop.permute.xlu1 %556  ;;  %v2715_v7 = vpop.permute.xlu0 %554 }
 0x16b   : > { %3770 = vst [vmem:[#allocation30_spill] sm:$0xff] %v2715_v7 }
 0x16c   : > { %1184 = vrot.lane.b32.xlu0 %v2719_v8, %s2144_s6  ;;  %1186 = vrot.lane.b32.xlu1 %v2723_v9, %s2144_s6 }
 0x16e   : > { %v561_v10 = vpop.permute.xlu1 %560  ;;  %v559_v11 = vpop.permute.xlu0 %558 }
 0x170   : > { %1188 = vrot.lane.b32.xlu0 %v2731_v12, %s2144_s6  ;;  %1190 = vrot.lane.b32.xlu1 %v2735_v15, %s2144_s6 }
 0x172   : > { %v2741_v16 = vpop.permute.xlu1 %588  ;;  %v2743_v19 = vpop.permute.xlu0 %586 }
 0x174   : > { %1192 = vrot.lane.b32.xlu0 %v2747_v22, %s2144_s6  ;;  %1194 = vrot.lane.b32.xlu1 %v2751_v23, %s2144_s6 }
 0x176   : > { %v2757_v26 = vpop.permute.xlu1 %592  ;;  %v2759_v27 = vpop.permute.xlu0 %590 }
 0x177   : > { %3777 = vst [vmem:[#allocation37_spill] sm:$0xff] %v2757_v26 }
 0x178   : > { %1196 = vrot.lane.b32.xlu0 %v2763_v28, %s2144_s6  ;;  %1198 = vrot.lane.b32.xlu1 %v2767_v29, %s2144_s6 }
 0x17a   : > { %v2773_v7 = vpop.permute.xlu1 %596  ;;  %v2775_v0 = vpop.permute.xlu0 %594 }
 0x17b   : > { %3780 = vst [vmem:[#allocation40_spill] sm:$0xff] %v2773_v7  ;;  %3781 = vst [vmem:[#allocation41_spill] sm:$0xff] %v2775_v0 }
 0x17c   : > { %1000 = vrot.lane.b32.xlu0 %v2611_v38, %s2147_s17  ;;  %1002 = vrot.lane.b32.xlu1 %v2615_v39, %s2147_s17  ;;  %v585_v39 = vadd.f32 %v561_v10, %v2467_v25  ;;  %v584_v38 = vadd.f32 %v559_v11, %v2464_v24 }
 0x17e   : > { %v2781_v26 = vpop.permute.xlu1 %600  ;;  %v2783_v62 = vpop.permute.xlu0 %598 }
 0x17f   : > { %3782 = vst [vmem:[#allocation42_spill] sm:$0xff] %v2781_v26  ;;  %3783 = vst [vmem:[#allocation43_spill] sm:$0xff] %v2783_v62 }
 0x180   : > { %1004 = vrot.lane.b32.xlu0 %v2623_v40, %s2147_s17  ;;  %1006 = vrot.lane.b32.xlu1 %v2627_v41, %s2147_s17 }
 0x182   : > { %v2789_v56 = vpop.permute.xlu1 %604  ;;  %v2791_v7 = vpop.permute.xlu0 %602 }
 0x183   : > { %3784 = vst [vmem:[#allocation44_spill] sm:$0xff] %v2791_v7 }
 0x184   : > { %1008 = vrot.lane.b32.xlu0 %v2635_v42, %s2147_s17  ;;  %1010 = vrot.lane.b32.xlu1 %v2639_v43, %s2147_s17 }
 0x186   : > { %v609_v62 = vpop.permute.xlu1 %608  ;;  %v607_v26 = vpop.permute.xlu0 %606 }
 0x187   : > { %v633_v40 = vadd.f32 %v609_v62, %v585_v39  ;;  %v2799_v0 = vadd.f32 %v607_v26, %v584_v38 }
 0x188   : > { %1012 = vrot.lane.b32.xlu0 %v2647_v44, %s2147_s17  ;;  %1014 = vrot.lane.b32.xlu1 %v2651_v45, %s2147_s17 }
 0x189   : > { %v665_v41 = vrot.slane %v633_v40, 1  ;;  %v702_v42 = vrot.slane %v633_v40, 2  ;;  %v3687_v7 = vrot.slane %v2799_v0, 1  ;;  %v3688_v43 = vrot.slane %v2799_v0, 2 }
 0x18a   : > { %v739_v10 = vpop.permute.xlu1 %738  ;;  %v737_v54 = vpop.permute.xlu0 %736 }
 0x18b   : > { %v666_v38 = vsel %vm646_vm3, %v3687_v7, %v665_v41  ;;  %v703_v40 = vsel %vm683_vm4, %v3688_v43, %v702_v42 }
 0x18c   : > { %1016 = vrot.lane.b32.xlu0 %v2663_v50, %s2147_s17  ;;  %1018 = vrot.lane.b32.xlu1 %v2667_v51, %s2147_s17  ;;  %v682_v39 = vadd.f32 %v666_v38, %v2799_v0 }
 0x18e   : > { %v743_v62 = vpop.permute.xlu1 %742  ;;  %v741_v11 = vpop.permute.xlu0 %740  ;;  %v2818_v26 = vadd.f32 %v703_v40, %v682_v39 }
 0x18f   : > { %v774_v50 = vadd.f32 %v741_v11, %v2518_v3 }
 0x190   : > { %1224 = vrot.lane.b32.xlu0 %v2687_v60, %s2147_s17  ;;  %1226 = vrot.lane.b32.xlu1 %v2691_v61, %s2147_s17 }
 0x192   : > { %v747_v41 = vpop.permute.xlu1 %746  ;;  %v745_v7 = vpop.permute.xlu0 %744 }
 0x194   : > { %1228 = vrot.lane.b32.xlu0 %v2703_v1, %s2147_s17  ;;  %1230 = vrot.lane.b32.xlu1 %v2707_v2, %s2147_s17 }
 0x196   : > { %v2828_v38 = vpop.permute.xlu1 %750  ;;  %v2830_v42 = vpop.permute.xlu0 %748 }
 0x198   : > { %1232 = vrot.lane.b32.xlu0 %v2719_v8, %s2147_s17  ;;  %1234 = vrot.lane.b32.xlu1 %v2723_v9, %s2147_s17  ;;  %v773_v8 = vadd.f32 %v739_v10, %v2504_v52  ;;  %v772_v9 = vadd.f32 %v737_v54, %v2507_v53  ;;  %v583_v54 = vadd.f32 %v2713_v6, %v2457_v21 }
 0x19a   : > { %v2836_v39 = vpop.permute.xlu1 %754  ;;  %v2838_v40 = vpop.permute.xlu0 %752 }
 0x19c   : > { %1236 = vrot.lane.b32.xlu0 %v2731_v12, %s2147_s17  ;;  %1238 = vrot.lane.b32.xlu1 %v2735_v15, %s2147_s17  ;;  %v775_v15 = vadd.f32 %v743_v62, %v2521_v4 }
 0x19e   : > { %v2844_v43 = vpop.permute.xlu1 %758  ;;  %v2846_v1 = vpop.permute.xlu0 %756 }
 0x1a0   : > { %1240 = vrot.lane.b32.xlu0 %v2747_v22, %s2147_s17  ;;  %1242 = vrot.lane.b32.xlu1 %v2751_v23, %s2147_s17 }
 0x1a2   : > { %v787_v2 = vpop.permute.xlu1 %786  ;;  %v785_v60 = vpop.permute.xlu0 %784 }
 0x1a3   : > { %v821_v12 = vadd.f32 %v787_v2, %v773_v8  ;;  %v820_v61 = vadd.f32 %v785_v60, %v772_v9  ;;  %v2864_v60 = vmul.f32 %v2507_v53, %v2407_v47  ;;  %v2868_v8 = vmul.f32 %v2504_v52, %v2404_v46 }
 0x1a4   : > { %1244 = vrot.lane.b32.xlu0 %v2763_v28, %s2147_s17  ;;  %1246 = vrot.lane.b32.xlu1 %v2767_v29, %s2147_s17  ;;  %v2873_v29 = vadd.f32 %v2789_v56, %v583_v54  ;;  %v2881_v52 = vmul.f32 %v2518_v3, %v2418_v58  ;;  %v777_v53 = vadd.f32 %v747_v41, %v2535_v18 }
 0x1a5   : > { %v845_v22 = vrot.slane %v821_v12, 1  ;;  %v881_v23 = vrot.slane %v821_v12, 2  ;;  %v844_v51 = vrot.slane %v820_v61, 1  ;;  %v880_v10 = vrot.slane %v820_v61, 2  ;;  %3785 = vst [vmem:[#allocation45_spill] sm:$0xff] %v2864_v60  ;;  %3786 = vst [vmem:[#allocation46_spill] sm:$0xff] %v2868_v8 }
 0x1a6   : > { %v791_v44 = vpop.permute.xlu1 %790  ;;  %v789_v2 = vpop.permute.xlu0 %788  ;;  %3787 = vst [vmem:[#allocation47_spill] sm:$0xff] %v2881_v52  ;;  %v2893_v54 = vmul.f32 %v2535_v18, %v2434_v5  ;;  %v2897_v3 = vmul.f32 %v2532_v17, %v2431_v63 }
 0x1a7   : > { %v846_v9 = vsel %vm646_vm3, %v844_v51, %v845_v22  ;;  %v882_v62 = vsel %vm683_vm4, %v880_v10, %v881_v23  ;;  %v823_v11 = vadd.f32 %v791_v44, %v775_v15  ;;  %v822_v28 = vadd.f32 %v789_v2, %v774_v50 }
 0x1a8   : > { %v872_v6 = vadd.f32 %v846_v9, %v820_v61  ;;  %1404 = vrot.lane.b32.xlu0 %v2864_v60, %s2144_s6  ;;  %1406 = vrot.lane.b32.xlu1 %v2868_v8, %s2144_s6  ;;  %v776_v51 = vadd.f32 %v745_v7, %v2532_v17  ;;  %v2889_v10 = vmul.f32 %v2521_v4, %v2421_v59  ;;  %v662_v9 = vrot.slane %v2873_v29, 1 }
 0x1a9   : > { %v847_v44 = vrot.slane %v822_v28, 1  ;;  %v883_v50 = vrot.slane %v822_v28, 2  ;;  %3790 = vst [vmem:[#allocation50_spill] sm:$0xff] %v2893_v54  ;;  %3791 = vst [vmem:[#allocation51_spill] sm:$0xff] %v2897_v3 }
 0x1aa   : > { %v2885_v15 = vadd.f32 %v882_v62, %v872_v6  ;;  %v795_v56 = vpop.permute.xlu1 %794  ;;  %v793_v61 = vpop.permute.xlu0 %792  ;;  %3789 = vst [vmem:[#allocation49_spill] sm:$0xff] %v2889_v10  ;;  %v849_v62 = vrot.slane %v823_v11, 1  ;;  %v885_v6 = vrot.slane %v823_v11, 2 }
 0x1ab   : > { %v848_v7 = vsel %vm646_vm3, %v845_v22, %v847_v44  ;;  %v884_v28 = vsel %vm683_vm4, %v881_v23, %v883_v50  ;;  %v825_v41 = vadd.f32 %v795_v56, %v777_v53  ;;  %v824_v2 = vadd.f32 %v793_v61, %v776_v51 }
 0x1ac   : > { %3788 = vst [vmem:[#allocation48_spill] sm:$0xff] %v2885_v15  ;;  %v873_v4 = vadd.f32 %v848_v7, %v821_v12  ;;  %1410 = vrot.lane.b32.xlu1 %v2889_v10, %s2144_s6  ;;  %1408 = vrot.lane.b32.xlu0 %v2881_v52, %s2144_s6  ;;  %v3792_v22 = vrot.slane %v2799_v0, 1  ;;  %v779_v53 = vadd.f32 %v2828_v38, %v2544_v30 }
 0x1ad   : > { %v852_v18 = vrot.slane %v825_v41, 1  ;;  %v888_v17 = vrot.slane %v825_v41, 2  ;;  %v850_v45 = vrot.slane %v824_v2, 1  ;;  %v886_v15 = vrot.slane %v824_v2, 2 }
 0x1ae   : > { %v664_v23 = vsel %vm646_vm3, %v662_v9, %v3792_v22  ;;  %v778_v12 = vadd.f32 %v2830_v42, %v2547_v31  ;;  %v2913_v51 = vadd.f32 %v884_v28, %v873_v4  ;;  %v799_v44 = vpop.permute.xlu1 %798  ;;  %v797_v50 = vpop.permute.xlu0 %796  ;;  %v2925_v38 = vmul.f32 %v2544_v30, %v2443_v13 }
 0x1af   : > { %v851_v56 = vsel %vm646_vm3, %v849_v62, %v850_v45  ;;  %v853_v61 = vsel %vm646_vm3, %v850_v45, %v852_v18  ;;  %v887_v7 = vsel %vm683_vm4, %v885_v6, %v886_v15  ;;  %v889_v41 = vsel %vm683_vm4, %v886_v15, %v888_v17 }
 0x1b0   : > { %v874_v5 = vadd.f32 %v851_v56, %v823_v11  ;;  %v875_v9 = vadd.f32 %v853_v61, %v824_v2  ;;  %1414 = vrot.lane.b32.xlu1 %v2893_v54, %s2144_s6  ;;  %1412 = vrot.lane.b32.xlu0 %v2897_v3, %s2144_s6  ;;  %3793 = vst [vmem:[#allocation52_spill] sm:$0xff] %v2925_v38 }
 0x1b1   : > { %v681_v42 = vadd.f32 %v664_v23, %v2873_v29  ;;  %v827_v28 = vadd.f32 %v799_v44, %v779_v53  ;;  %v826_v45 = vadd.f32 %v797_v50, %v778_v12  ;;  %v2930_v62 = vmul.f32 %v2547_v31, %v2446_v14 }
 0x1b2   : > { %v781_v11 = vadd.f32 %v2836_v39, %v2550_v32  ;;  %v780_v15 = vadd.f32 %v2838_v40, %v2563_v35  ;;  %v2936_v2 = vadd.f32 %v887_v7, %v874_v5  ;;  %v2938_v6 = vadd.f32 %v889_v41, %v875_v9  ;;  %v803_v30 = vpop.permute.xlu1 %802  ;;  %v801_v4 = vpop.permute.xlu0 %800 }
 0x1b3   : > { %3794 = vst [vmem:[#allocation53_spill] sm:$0xff] %v2930_v62  ;;  %v855_v18 = vrot.slane %v827_v28, 1  ;;  %v891_v17 = vrot.slane %v827_v28, 2  ;;  %v854_v22 = vrot.slane %v826_v45, 1  ;;  %v890_v23 = vrot.slane %v826_v45, 2 }
 0x1b4   : > { %v699_v53 = vrot.slane %v2873_v29, 2  ;;  %v829_v31 = vadd.f32 %v803_v30, %v781_v11  ;;  %1418 = vrot.lane.b32.xlu1 %v2925_v38, %s2144_s6  ;;  %1416 = vrot.lane.b32.xlu0 %v2930_v62, %s2144_s6  ;;  %v2947_v5 = vmul.f32 %v2563_v35, %v2454_v20  ;;  %v783_v39 = vadd.f32 %v2844_v43, %v2556_v34 }
 0x1b5   : > { %v856_v40 = vsel %vm646_vm3, %v854_v22, %v855_v18  ;;  %v892_v12 = vsel %vm683_vm4, %v890_v23, %v891_v17  ;;  %v828_v44 = vadd.f32 %v801_v4, %v780_v15  ;;  %v3796_v29 = vrot.slane %v2799_v0, 2 }
 0x1b6   : > { %3795 = vst [vmem:[#allocation54_spill] sm:$0xff] %v2947_v5  ;;  %v782_v56 = vadd.f32 %v2846_v1, %v2553_v33  ;;  %v876_v61 = vadd.f32 %v856_v40, %v826_v45  ;;  %v807_v7 = vpop.permute.xlu1 %806  ;;  %v805_v41 = vpop.permute.xlu0 %804  ;;  %v2960_v35 = vmul.f32 %v2550_v32, %v2457_v21  ;;  %v2970_v0 = vmul.f32 %v2556_v34, %v2467_v25 }
 0x1b7   : > { %v701_v50 = vsel %vm683_vm4, %v699_v53, %v3796_v29  ;;  %v857_v9 = vrot.slane %v828_v44, 1  ;;  %v893_v11 = vrot.slane %v828_v44, 2  ;;  %v831_v30 = vadd.f32 %v807_v7, %v783_v39 }
 0x1b8   : > { %3797 = vst [vmem:[#allocation55_spill] sm:$0xff] %v2960_v35  ;;  %v718_v43 = vadd.f32 %v701_v50, %v681_v42  ;;  %v2962_v22 = vadd.f32 %v892_v12, %v876_v61  ;;  %v830_v15 = vadd.f32 %v805_v41, %v782_v56  ;;  %1422 = vrot.lane.b32.xlu1 %v2960_v35, %s2144_s6  ;;  %3798 = vst [vmem:[#allocation56_spill] sm:$0xff] %v2970_v0 }
 0x1b9   : > { %1420 = vrot.lane.b32.xlu0 %v2947_v5, %s2144_s6  ;;  %v858_v21 = vsel %vm646_vm3, %v855_v18, %v857_v9  ;;  %v894_v32 = vsel %vm683_vm4, %v891_v17, %v893_v11  ;;  %v862_v1 = vrot.slane %v831_v30, 1  ;;  %v898_v42 = vrot.slane %v831_v30, 2 }
 0x1ba   : > { %v859_v45 = vrot.slane %v829_v31, 1  ;;  %v877_v4 = vadd.f32 %v858_v21, %v827_v28  ;;  %v860_v23 = vrot.slane %v830_v15, 1  ;;  %v896_v53 = vrot.slane %v830_v15, 2  ;;  %v951_v39 = vpop.permute.xlu1 %950  ;;  %v949_v40 = vpop.permute.xlu0 %948 }
 0x1bb   : > { %v726_v12 = vmul.f32 0.11111111, %v718_v43  ;;  %v895_v44 = vrot.slane %v829_v31, 2  ;;  %v2976_v29 = vmul.f32 %v2553_v33, %v2464_v24  ;;  %v727_v25 = vmul.f32 0.11111111, %v2818_v26 }
 0x1bc   : > { %v2979_v34 = vadd.f32 %v894_v32, %v877_v4  ;;  %v861_v18 = vsel %vm646_vm3, %v859_v45, %v860_v23  ;;  %v863_v17 = vsel %vm646_vm3, %v860_v23, %v862_v1  ;;  %1426 = vrot.lane.b32.xlu1 %v2970_v0, %s2144_s6  ;;  %v899_v61 = vsel %vm683_vm4, %v896_v53, %v898_v42 }
 0x1bd   : > { %3799 = vst [vmem:[#allocation57_spill] sm:$0xff] %v2976_v29  ;;  %v878_v28 = vadd.f32 %v861_v18, %v829_v31  ;;  %v879_v50 = vadd.f32 %v863_v17, %v830_v15  ;;  %v897_v56 = vsel %vm683_vm4, %v895_v44, %v896_v53  ;;  %1424 = vrot.lane.b32.xlu0 %v2976_v29, %s2144_s6  ;;  %v1614_v41 = vmul.f32 2.0, %v726_v12 }
 0x1be   : > { %v2989_v24 = vpop.permute.xlu1 %954  ;;  %v2991_v33 = vpop.permute.xlu0 %952  ;;  %v1615_v43 = vmul.f32 2.0, %v727_v25  ;;  %v3007_v32 = vmul.f32 %v726_v12, %v726_v12  ;;  %v3009_v1 = vmul.f32 %v727_v25, %v727_v25 }
 0x1bf   : > { %v914_v26 = vadd.f32 %v897_v56, %v878_v28  ;;  %v915_v7 = vadd.f32 %v899_v61, %v879_v50 }
 0x1c0   : > { %1454 = vrot.lane.b32.xlu1 %v2868_v8, %s2147_s17 }
 0x1c1   : > { %v922_v31 = vmul.f32 0.11111111, %v914_v26  ;;  %v923_v9 = vmul.f32 0.11111111, %v915_v7  ;;  %1452 = vrot.lane.b32.xlu0 %v2864_v60, %s2147_s17  ;;  %v576_v26 = vadd.f32 %v2675_v55, %v2418_v58  ;;  %v985_v7 = vadd.f32 %v951_v39, %v2603_v37  ;;  %v3808_v37 = vld [vmem:[#allocation22_spill] sm:$0xff]  ;;  %v3809_v55 = vld [vmem:[#allocation11_spill] sm:$0xff] }
 0x1c2   : > { %v2997_v11 = vpop.permute.xlu1 %958  ;;  %v2999_v30 = vpop.permute.xlu0 %956  ;;  %v3810_v39 = vld [vmem:[#allocation23_spill] sm:$0xff] }
 0x1c3   : > { %v3001_v15 = vmul.f32 %v1614_v41, %v922_v31  ;;  %v3003_v21 = vmul.f32 %v1615_v43, %v923_v9  ;;  %v3011_v42 = vmul.f32 %v922_v31, %v922_v31  ;;  %v3013_v45 = vmul.f32 %v923_v9, %v923_v9 }
 0x1c4   : > { %1458 = vrot.lane.b32.xlu1 %v2889_v10, %s2147_s17  ;;  %v3031_v18 = vmul.f32 %v922_v31, %v726_v12  ;;  %v3033_v17 = vmul.f32 %v923_v9, %v727_v25  ;;  %v575_v12 = vadd.f32 %v2657_v48, %v2404_v46  ;;  %v574_v25 = vadd.f32 %v2659_v49, %v2407_v47  ;;  %v3835_v10 = vld [vmem:[#allocation14_spill] sm:$0xff] }
 0x1c5   : > { %3800 = vst [vmem:[#allocation58_spill] sm:$0xff] %v3001_v15  ;;  %3801 = vst [vmem:[#allocation59_spill] sm:$0xff] %v3003_v21  ;;  %1456 = vrot.lane.b32.xlu0 %v2881_v52, %s2147_s17  ;;  %v3023_v53 = vadd.f32 %v3011_v42, %v3007_v32  ;;  %v3027_v44 = vadd.f32 %v3013_v45, %v3009_v1  ;;  %v984_v41 = vadd.f32 %v949_v40, %v2599_v36  ;;  %v3811_v21 = vld [vmem:[#allocation26_spill] sm:$0xff]  ;;  %v3818_v15 = vld [vmem:[#allocation43_spill] sm:$0xff] }
 0x1c6   : > { %3802 = vst [vmem:[#allocation60_spill] sm:$0xff] %v3011_v42  ;;  %3803 = vst [vmem:[#allocation61_spill] sm:$0xff] %v3013_v45  ;;  %v3017_v4 = vpop.permute.xlu1 %962  ;;  %v3019_v23 = vpop.permute.xlu0 %960  ;;  %v578_v43 = vadd.f32 %v2683_v57, %v2431_v63  ;;  %v623_v46 = vadd.f32 %v2741_v16, %v575_v12  ;;  %v622_v47 = vadd.f32 %v2743_v19, %v574_v25  ;;  %v3812_v57 = vld [vmem:[#allocation41_spill] sm:$0xff] }
 0x1c7   : > { %3804 = vst [vmem:[#allocation62_spill] sm:$0xff] %v3023_v53  ;;  %3805 = vst [vmem:[#allocation63_spill] sm:$0xff] %v3027_v44  ;;  %v624_v31 = vadd.f32 %v2759_v27, %v576_v26  ;;  %v577_v36 = vadd.f32 %v3808_v37, %v2421_v59  ;;  %v579_v40 = vadd.f32 %v3810_v39, %v3809_v55  ;;  %v3813_v59 = vld [vmem:[#allocation27_spill] sm:$0xff] }
 0x1c8   : > { %1462 = vrot.lane.b32.xlu1 %v2893_v54, %s2147_s17  ;;  %3806 = vst [vmem:[#allocation64_spill] sm:$0xff] %v3031_v18  ;;  %3807 = vst [vmem:[#allocation65_spill] sm:$0xff] %v3033_v17  ;;  %v581_v63 = vadd.f32 %v3811_v21, %v2443_v13  ;;  %v3075_v16 = vadd.f32 %v3812_v57, %v578_v43  ;;  %v580_v26 = vadd.f32 %v3813_v59, %v2446_v14  ;;  %v3814_v13 = vld [vmem:[#allocation30_spill] sm:$0xff]  ;;  %v3816_v57 = vld [vmem:[#allocation40_spill] sm:$0xff] }
 0x1c9   : > { %1460 = vrot.lane.b32.xlu0 %v2897_v3, %s2147_s17  ;;  %v582_v21 = vadd.f32 %v3814_v13, %v2454_v20  ;;  %v650_v55 = vrot.slane %v624_v31, 1  ;;  %v627_v59 = vadd.f32 %v3816_v57, %v579_v40  ;;  %v3817_v20 = vld [vmem:[#allocation42_spill] sm:$0xff]  ;;  %v988_v60 = vadd.f32 %v2999_v30, %v3835_v10 }
 0x1ca   : > { %v3037_v28 = vpop.permute.xlu1 %966  ;;  %v3039_v50 = vpop.permute.xlu0 %964  ;;  %v629_v13 = vadd.f32 %v3817_v20, %v581_v63  ;;  %v628_v17 = vadd.f32 %v3818_v15, %v580_v26  ;;  %v684_v63 = vrot.slane %v622_v47, 2  ;;  %v690_v20 = vrot.slane %v3075_v16, 2 }
 0x1cb   : > { %v655_v57 = vrot.slane %v627_v59, 1 }
 0x1cc   : > { %1466 = vrot.lane.b32.xlu1 %v2925_v38, %s2147_s17  ;;  %v658_v15 = vrot.slane %v629_v13, 1  ;;  %v694_v3 = vrot.slane %v628_v17, 2 }
 0x1cd   : > { %1464 = vrot.lane.b32.xlu0 %v2930_v62, %s2147_s17 }
 0x1ce   : > { %v3045_v56 = vpop.permute.xlu1 %970  ;;  %v3047_v61 = vpop.permute.xlu0 %968 }
 0x1d0   : > { %1470 = vrot.lane.b32.xlu1 %v2960_v35, %s2147_s17 }
 0x1d1   : > { %1468 = vrot.lane.b32.xlu0 %v2947_v5, %s2147_s17 }
 0x1d2   : > { %v999_v48 = vpop.permute.xlu1 %998  ;;  %v997_v49 = vpop.permute.xlu0 %996 }
 0x1d3   : > { %v3066_v9 = vadd.f32 %v999_v48, %v985_v7  ;;  %v1032_v58 = vadd.f32 %v997_v49, %v984_v41  ;;  %v648_v7 = vrot.slane %v623_v46, 1  ;;  %v647_v41 = vrot.slane %v622_v47, 1  ;;  %v3815_v49 = vld [vmem:[#allocation37_spill] sm:$0xff] }
 0x1d4   : > { %1474 = vrot.lane.b32.xlu1 %v2970_v0, %s2147_s17  ;;  %v625_v37 = vadd.f32 %v3815_v49, %v577_v36  ;;  %v3819_v0 = vld [vmem:[#allocation44_spill] sm:$0xff] }
 0x1d5   : > { %v3709_v19 = vrot.slane %v3066_v9, 1  ;;  %v3710_v27 = vrot.slane %v3066_v9, 2  ;;  %v1056_v12 = vrot.slane %v1032_v58, 1  ;;  %v1092_v25 = vrot.slane %v1032_v58, 2  ;;  %1472 = vrot.lane.b32.xlu0 %v2976_v29, %s2147_s17 }
 0x1d6   : > { %v3087_v43 = vpop.permute.xlu1 %1178  ;;  %v3089_v48 = vpop.permute.xlu0 %1176  ;;  %v653_v29 = vrot.slane %v3075_v16, 1  ;;  %v630_v36 = vadd.f32 %v3819_v0, %v582_v21  ;;  %v649_v49 = vsel %vm646_vm3, %v647_v41, %v648_v7  ;;  %v651_v40 = vsel %vm646_vm3, %v648_v7, %v650_v55 }
 0x1d7   : > { %v1058_v39 = vsel %vm646_vm3, %v1056_v12, %v3709_v19  ;;  %v1094_v14 = vsel %vm683_vm4, %v1092_v25, %v3710_v27  ;;  %v685_v25 = vrot.slane %v623_v46, 2  ;;  %v652_v27 = vrot.slane %v625_v37, 1 }
 0x1d8   : > { %v1084_v18 = vadd.f32 %v1058_v39, %v1032_v58  ;;  %v657_v58 = vrot.slane %v628_v17, 1  ;;  %v675_v26 = vadd.f32 %v649_v49, %v622_v47  ;;  %v687_v39 = vrot.slane %v624_v31, 2 }
 0x1d9   : > { %v654_v0 = vsel %vm646_vm3, %v652_v27, %v653_v29  ;;  %v660_v21 = vrot.slane %v630_v36, 1  ;;  %v676_v41 = vadd.f32 %v651_v40, %v623_v46  ;;  %v686_v35 = vsel %vm683_vm4, %v684_v63, %v685_v25 }
 0x1da   : > { %v3104_v5 = vadd.f32 %v1094_v14, %v1084_v18  ;;  %v3106_v12 = vpop.permute.xlu1 %1182  ;;  %v3108_v19 = vpop.permute.xlu0 %1180  ;;  %v656_v7 = vsel %vm646_vm3, %v653_v29, %v655_v57  ;;  %v677_v55 = vadd.f32 %v654_v0, %v625_v37  ;;  %v659_v62 = vsel %vm646_vm3, %v657_v58, %v658_v15 }
 0x1db   : > { %v712_v38 = vadd.f32 %v686_v35, %v675_v26  ;;  %v689_v47 = vrot.slane %v625_v37, 2  ;;  %v688_v31 = vsel %vm683_vm4, %v685_v25, %v687_v39  ;;  %v661_v27 = vsel %vm646_vm3, %v658_v15, %v660_v21  ;;  %v3820_v26 = vld [vmem:[#allocation48_spill] sm:$0xff] }
 0x1dc   : > { %v713_v46 = vadd.f32 %v688_v31, %v676_v41  ;;  %v692_v49 = vrot.slane %v627_v59, 2  ;;  %v695_v40 = vrot.slane %v629_v13, 2  ;;  %v678_v63 = vadd.f32 %v656_v7, %v3075_v16 }
 0x1dd   : > { %v691_v29 = vsel %vm683_vm4, %v689_v47, %v690_v20  ;;  %v679_v57 = vadd.f32 %v659_v62, %v628_v17  ;;  %v697_v58 = vrot.slane %v630_v36, 2  ;;  %v680_v37 = vadd.f32 %v661_v27, %v629_v13 }
 0x1de   : > { %v3112_v18 = vpop.permute.xlu1 %1186  ;;  %v3114_v14 = vpop.permute.xlu0 %1184  ;;  %v714_v35 = vadd.f32 %v691_v29, %v677_v55  ;;  %v3129_v25 = vmul.f32 0.11111111, %v3820_v26  ;;  %v3132_v15 = vmul.f32 0.11111111, %v2913_v51  ;;  %v3134_v59 = vmul.f32 0.11111111, %v712_v38 }
 0x1df   : > { %v693_v39 = vsel %vm683_vm4, %v690_v20, %v692_v49  ;;  %v696_v0 = vsel %vm683_vm4, %v694_v3, %v695_v40  ;;  %v3139_v16 = vmul.f32 0.11111111, %v2936_v2  ;;  %v3145_v17 = vmul.f32 0.11111111, %v713_v46  ;;  %v3833_v26 = vld [vmem:[#allocation13_spill] sm:$0xff] }
 0x1e0   : > { %3821 = vst [vmem:[#allocation22_spill] sm:$0xff] %v3129_v25  ;;  %3822 = vst [vmem:[#allocation11_spill] sm:$0xff] %v3132_v15  ;;  %v715_v13 = vadd.f32 %v693_v39, %v678_v63  ;;  %v716_v36 = vadd.f32 %v696_v0, %v679_v57  ;;  %v698_v51 = vsel %vm683_vm4, %v695_v40, %v697_v58  ;;  %v3148_v41 = vmul.f32 0.11111111, %v714_v35  ;;  %v3831_v57 = vld [vmem:[#allocation12_spill] sm:$0xff] }
 0x1e1   : > { %3823 = vst [vmem:[#allocation23_spill] sm:$0xff] %v3139_v16  ;;  %3824 = vst [vmem:[#allocation26_spill] sm:$0xff] %v3145_v17  ;;  %v717_v38 = vadd.f32 %v698_v51, %v680_v37  ;;  %v3152_v20 = vmul.f32 %v3129_v25, %v3129_v25  ;;  %v3156_v3 = vmul.f32 %v3132_v15, %v3132_v15  ;;  %v3159_v2 = vmul.f32 0.11111111, %v2938_v6 }
 0x1e2   : > { %v3122_v54 = vpop.permute.xlu1 %1190  ;;  %v3124_v52 = vpop.permute.xlu0 %1188  ;;  %3825 = vst [vmem:[#allocation41_spill] sm:$0xff] %v3148_v41  ;;  %v3163_v7 = vmul.f32 %v3134_v59, %v3134_v59  ;;  %v3171_v31 = vmul.f32 %v3139_v16, %v3139_v16  ;;  %v3173_v27 = vmul.f32 0.11111111, %v715_v13  ;;  %v3175_v46 = vmul.f32 0.11111111, %v716_v36 }
 0x1e3   : > { %3826 = vst [vmem:[#allocation27_spill] sm:$0xff] %v3159_v2  ;;  %v3179_v6 = vmul.f32 %v3145_v17, %v3145_v17  ;;  %v3181_v49 = vmul.f32 0.11111111, %v717_v38  ;;  %v3184_v40 = vmul.f32 0.11111111, %v2962_v22  ;;  %v3188_v63 = vmul.f32 %v3148_v41, %v3148_v41 }
 0x1e4   : > { %3827 = vst [vmem:[#allocation30_spill] sm:$0xff] %v3173_v27  ;;  %3828 = vst [vmem:[#allocation37_spill] sm:$0xff] %v3175_v46  ;;  %v1656_v29 = vadd.f32 %v3152_v20, %v3163_v7  ;;  %v986_v58 = vadd.f32 %v2991_v33, %v3831_v57  ;;  %v3197_v37 = vmul.f32 0.11111111, %v2979_v34  ;;  %v987_v22 = vadd.f32 %v2989_v24, %v3833_v26 }
 0x1e5   : > { %3829 = vst [vmem:[#allocation40_spill] sm:$0xff] %v3181_v49  ;;  %3830 = vst [vmem:[#allocation42_spill] sm:$0xff] %v3184_v40  ;;  %v1657_v35 = vadd.f32 %v3156_v3, %v3179_v6  ;;  %v3203_v13 = vmul.f32 %v3159_v2, %v3159_v2  ;;  %v1658_v36 = vadd.f32 %v3171_v31, %v3188_v63  ;;  %v3837_v10 = vrot.slane %v3066_v9, 2 }
 0x1e6   : > { %v3141_v21 = vpop.permute.xlu1 %1194  ;;  %v3143_v62 = vpop.permute.xlu0 %1192  ;;  %3832 = vst [vmem:[#allocation43_spill] sm:$0xff] %v3197_v37  ;;  %v3209_v33 = vmul.f32 %v3173_v27, %v3173_v27  ;;  %v3213_v34 = vmul.f32 %v3175_v46, %v3175_v46  ;;  %v3217_v24 = vmul.f32 %v3181_v49, %v3181_v49  ;;  %v3219_v57 = vadd.f32 0.0001, %v1656_v29  ;;  %v3838_v27 = vld [vmem:[#allocation17_spill] sm:$0xff] }
 0x1e7   : > { %v3223_v26 = vmul.f32 %v3184_v40, %v3184_v40  ;;  %v3233_v49 = vadd.f32 0.0001, %v1658_v36  ;;  %v3237_v40 = vmul.f32 %v3197_v37, %v3197_v37 }
 0x1e8   : > { %v1659_v29 = vadd.f32 %v3203_v13, %v3209_v33 }
 0x1e9   : > { %v1660_v36 = vadd.f32 %v3223_v26, %v3213_v34 }
 0x1ea   : > { %v3165_v55 = vpop.permute.xlu1 %1198  ;;  %v3167_v47 = vpop.permute.xlu0 %1196 }
 0x1ee   : > { %v1003_v39 = vpop.permute.xlu1 %1002  ;;  %v1001_v0 = vpop.permute.xlu0 %1000 }
 0x1ef   : > { %v1034_v51 = vadd.f32 %v1001_v0, %v986_v58  ;;  %v1035_v38 = vadd.f32 %v1003_v39, %v987_v22  ;;  %v3834_v58 = vld [vmem:[#allocation15_spill] sm:$0xff]  ;;  %v3229_v39 = vadd.f32 0.0001, %v1657_v35 }
 0x1f0   : > { %v989_v0 = vadd.f32 %v2997_v11, %v3834_v58  ;;  %v3836_v11 = vrot.slane %v3066_v9, 1 }
 0x1f1   : > { %v1059_v8 = vrot.slane %v1034_v51, 1  ;;  %v1095_v44 = vrot.slane %v1034_v51, 2  ;;  %v1061_v2 = vrot.slane %v1035_v38, 1  ;;  %v1097_v16 = vrot.slane %v1035_v38, 2 }
 0x1f2   : > { %v1007_v53 = vpop.permute.xlu1 %1006  ;;  %v1005_v22 = vpop.permute.xlu0 %1004 }
 0x1f3   : > { %v1060_v58 = vsel %vm646_vm3, %v3836_v11, %v1059_v8  ;;  %v1096_v30 = vsel %vm683_vm4, %v3837_v10, %v1095_v44  ;;  %v1037_v51 = vadd.f32 %v1007_v53, %v989_v0  ;;  %v1036_v35 = vadd.f32 %v1005_v22, %v988_v60  ;;  %v3839_v11 = vld [vmem:[#allocation16_spill] sm:$0xff] }
 0x1f4   : > { %v1085_v45 = vadd.f32 %v1060_v58, %v3066_v9  ;;  %v991_v8 = vadd.f32 %v3017_v4, %v3838_v27  ;;  %v990_v41 = vadd.f32 %v3019_v23, %v3839_v11  ;;  %v3254_v0 = vadd.f32 0.0001, %v1659_v29  ;;  %v3840_v23 = vld [vmem:[#allocation19_spill] sm:$0xff] }
 0x1f5   : > { %v1064_v42 = vrot.slane %v1037_v51, 1  ;;  %v1100_v37 = vrot.slane %v1037_v51, 2  ;;  %v1062_v15 = vrot.slane %v1036_v35, 1  ;;  %v1098_v46 = vrot.slane %v1036_v35, 2 }
 0x1f6   : > { %v3252_v44 = vadd.f32 %v1096_v30, %v1085_v45  ;;  %v1011_v60 = vpop.permute.xlu1 %1010  ;;  %v1009_v53 = vpop.permute.xlu0 %1008  ;;  %v3260_v27 = vadd.f32 0.0001, %v1660_v36  ;;  %v993_v45 = vadd.f32 %v3037_v28, %v3840_v23  ;;  %v3841_v30 = vld [vmem:[#allocation18_spill] sm:$0xff] }
 0x1f7   : > { %v1063_v9 = vsel %vm646_vm3, %v1061_v2, %v1062_v15  ;;  %v1065_v22 = vsel %vm646_vm3, %v1062_v15, %v1064_v42  ;;  %v1099_v58 = vsel %vm683_vm4, %v1097_v16, %v1098_v46  ;;  %v1101_v10 = vsel %vm683_vm4, %v1098_v46, %v1100_v37 }
 0x1f8   : > { %v1086_v51 = vadd.f32 %v1063_v9, %v1035_v38  ;;  %v1087_v25 = vadd.f32 %v1065_v22, %v1036_v35  ;;  %v1039_v4 = vadd.f32 %v1011_v60, %v991_v8  ;;  %v992_v29 = vadd.f32 %v3039_v50, %v3841_v30  ;;  %v3842_v35 = vld [vmem:[#allocation21_spill] sm:$0xff]  ;;  %v3843_v8 = vld [vmem:[#allocation20_spill] sm:$0xff] }
 0x1f9   : > { %v1038_v11 = vadd.f32 %v1009_v53, %v990_v41  ;;  %v3268_v2 = vadd.f32 %v3237_v40, %v3217_v24  ;;  %v3271_v42 = vmul.f32 0.11111111, %v3104_v5  ;;  %v995_v28 = vadd.f32 %v3045_v56, %v3842_v35  ;;  %v3844_v53 = vld [vmem:[#allocation25_spill] sm:$0xff]  ;;  %v3845_v9 = vld [vmem:[#allocation24_spill] sm:$0xff] }
 0x1fa   : > { %v3273_v15 = vadd.f32 %v1099_v58, %v1086_v51  ;;  %v3275_v16 = vadd.f32 %v1101_v10, %v1087_v25  ;;  %v1067_v46 = vrot.slane %v1039_v4, 1  ;;  %v1015_v37 = vpop.permute.xlu1 %1014  ;;  %v1013_v38 = vpop.permute.xlu0 %1012  ;;  %v1103_v36 = vrot.slane %v1039_v4, 2  ;;  %v3846_v58 = vld [vmem:[#allocation29_spill] sm:$0xff]  ;;  %v3847_v51 = vld [vmem:[#allocation28_spill] sm:$0xff] }
 0x1fb   : > { %v1066_v50 = vrot.slane %v1038_v11, 1  ;;  %v1102_v41 = vrot.slane %v1038_v11, 2  ;;  %v994_v60 = vadd.f32 %v3047_v61, %v3843_v8  ;;  %v1213_v5 = vadd.f32 %v3087_v43, %v3844_v53 }
 0x1fc   : > { %v1212_v22 = vadd.f32 %v3089_v48, %v3845_v9  ;;  %v1040_v25 = vadd.f32 %v1013_v38, %v992_v29  ;;  %v1215_v10 = vadd.f32 %v3106_v12, %v3846_v58  ;;  %v1214_v23 = vadd.f32 %v3108_v19, %v3847_v51  ;;  %v3848_v48 = vld [vmem:[#allocation32_spill] sm:$0xff]  ;;  %v3849_v58 = vld [vmem:[#allocation31_spill] sm:$0xff] }
 0x1fd   : > { %v1068_v56 = vsel %vm646_vm3, %v1066_v50, %v1067_v46  ;;  %v1104_v30 = vsel %vm683_vm4, %v1102_v41, %v1103_v36  ;;  %v1041_v8 = vadd.f32 %v1015_v37, %v993_v45  ;;  %v1217_v29 = vadd.f32 %v3112_v18, %v3848_v48  ;;  %v3850_v50 = vld [vmem:[#allocation34_spill] sm:$0xff] }
 0x1fe   : > { %v1088_v35 = vadd.f32 %v1068_v56, %v1038_v11  ;;  %v1069_v43 = vrot.slane %v1040_v25, 1  ;;  %v1019_v53 = vpop.permute.xlu1 %1018  ;;  %v1017_v17 = vpop.permute.xlu0 %1016  ;;  %v1105_v38 = vrot.slane %v1040_v25, 2  ;;  %v1216_v19 = vadd.f32 %v3114_v14, %v3849_v58  ;;  %v3851_v14 = vld [vmem:[#allocation33_spill] sm:$0xff]  ;;  %v3852_v58 = vld [vmem:[#allocation36_spill] sm:$0xff] }
 0x1ff   : > { %v1043_v12 = vadd.f32 %v1019_v53, %v995_v28  ;;  %v1042_v9 = vadd.f32 %v1017_v17, %v994_v60  ;;  %v3299_v41 = vadd.f32 %v3122_v54, %v3850_v50  ;;  %v1071_v18 = vrot.slane %v1041_v8, 1 }
 0x200   : > { %v3301_v51 = vadd.f32 %v1104_v30, %v1088_v35  ;;  %v1070_v45 = vsel %vm646_vm3, %v1067_v46, %v1069_v43  ;;  %v1106_v37 = vsel %vm683_vm4, %v1103_v36, %v1105_v38  ;;  %v1107_v25 = vrot.slane %v1041_v8, 2 }
 0x201   : > { %v1089_v11 = vadd.f32 %v1070_v45, %v1039_v4  ;;  %v1074_v56 = vrot.slane %v1043_v12, 1  ;;  %v1110_v61 = vrot.slane %v1043_v12, 2  ;;  %v1072_v28 = vrot.slane %v1042_v9, 1 }
 0x202   : > { %v1108_v17 = vrot.slane %v1042_v9, 2  ;;  %v1227_v60 = vpop.permute.xlu1 %1226  ;;  %v1225_v53 = vpop.permute.xlu0 %1224  ;;  %v1218_v48 = vadd.f32 %v3124_v52, %v3851_v14  ;;  %v3311_v4 = vadd.f32 %v3141_v21, %v3852_v58  ;;  %v3317_v38 = vmul.f32 0.11111111, %v3252_v44 }
 0x203   : > { %v3307_v54 = vadd.f32 %v1106_v37, %v1089_v11  ;;  %v1261_v30 = vadd.f32 %v1227_v60, %v1213_v5  ;;  %v1260_v35 = vadd.f32 %v1225_v53, %v1212_v22  ;;  %v1073_v46 = vsel %vm646_vm3, %v1071_v18, %v1072_v28  ;;  %v3853_v60 = vld [vmem:[#allocation35_spill] sm:$0xff] }
 0x204   : > { %v1075_v36 = vsel %vm646_vm3, %v1072_v28, %v1074_v56  ;;  %v1109_v43 = vsel %vm683_vm4, %v1107_v25, %v1108_v17  ;;  %v1090_v12 = vadd.f32 %v1073_v46, %v1041_v8  ;;  %v1111_v52 = vsel %vm683_vm4, %v1108_v17, %v1110_v61  ;;  %v3854_v53 = vld [vmem:[#allocation39_spill] sm:$0xff] }
 0x205   : > { %v1091_v50 = vadd.f32 %v1075_v36, %v1042_v9  ;;  %v1285_v45 = vrot.slane %v1261_v30, 1  ;;  %v1321_v5 = vrot.slane %v1261_v30, 2  ;;  %v1284_v22 = vrot.slane %v1260_v35, 1 }
 0x206   : > { %v1320_v11 = vrot.slane %v1260_v35, 2  ;;  %v1231_v37 = vpop.permute.xlu1 %1230  ;;  %v1229_v21 = vpop.permute.xlu0 %1228  ;;  %v1220_v18 = vadd.f32 %v3143_v62, %v3853_v60  ;;  %v3324_v56 = vadd.f32 %v3165_v55, %v3854_v53  ;;  %v1126_v25 = vadd.f32 %v1109_v43, %v1090_v12 }
 0x207   : > { %v1127_v44 = vadd.f32 %v1111_v52, %v1091_v50  ;;  %v3327_v8 = vmul.f32 0.11111111, %v3273_v15  ;;  %v1286_v61 = vsel %vm646_vm3, %v1284_v22, %v1285_v45  ;;  %v1262_v28 = vadd.f32 %v1229_v21, %v1214_v23 }
 0x208   : > { %v1322_v9 = vsel %vm683_vm4, %v1320_v11, %v1321_v5  ;;  %v1145_v17 = vsub.f32 %v3317_v38, %v3179_v6  ;;  %v3333_v14 = vmul.f32 0.11111111, %v1126_v25  ;;  %v1312_v58 = vadd.f32 %v1286_v61, %v1260_v35 }
 0x209   : > { %v3335_v62 = vmul.f32 0.11111111, %v1127_v44  ;;  %v3338_v55 = vmul.f32 0.11111111, %v3275_v16  ;;  %v1263_v46 = vadd.f32 %v1231_v37, %v1215_v10  ;;  %v1287_v36 = vrot.slane %v1262_v28, 1 }
 0x20a   : > { %v1323_v15 = vrot.slane %v1262_v28, 2  ;;  %v1235_v43 = vpop.permute.xlu1 %1234  ;;  %v1233_v12 = vpop.permute.xlu0 %1232  ;;  %v1150_v50 = vsub.f32 %v3333_v14, %v3007_v32  ;;  %v1348_v6 = vadd.f32 %v1322_v9, %v1312_v58  ;;  %v1146_v52 = vsub.f32 %v3327_v8, %v3188_v63 }
 0x20b   : > { %v1151_v23 = vsub.f32 %v3335_v62, %v3009_v1  ;;  %v1265_v38 = vadd.f32 %v1235_v43, %v1217_v29  ;;  %v1288_v35 = vsel %vm646_vm3, %v1285_v45, %v1287_v36  ;;  %v1264_v10 = vadd.f32 %v1233_v12, %v1216_v19 }
 0x20c   : > { %v1324_v16 = vsel %vm683_vm4, %v1321_v5, %v1323_v15  ;;  %v1356_v22 = vmul.f32 0.11111111, %v1348_v6  ;;  %v1313_v11 = vadd.f32 %v1288_v35, %v1261_v30  ;;  %v1289_v60 = vrot.slane %v1263_v46, 1 }
 0x20d   : > { %v1292_v37 = vrot.slane %v1265_v38, 1  ;;  %v1328_v21 = vrot.slane %v1265_v38, 2  ;;  %v1325_v53 = vrot.slane %v1263_v46, 2  ;;  %v1290_v25 = vrot.slane %v1264_v10, 1 }
 0x20e   : > { %v1326_v44 = vrot.slane %v1264_v10, 2  ;;  %v1239_v61 = vpop.permute.xlu1 %1238  ;;  %v1237_v28 = vpop.permute.xlu0 %1236  ;;  %v1372_v29 = vsub.f32 %v1356_v22, %v3152_v20  ;;  %v1349_v9 = vadd.f32 %v1324_v16, %v1313_v11  ;;  %v3855_v58 = vsub.f32 %v3271_v42, %v3163_v7 }
 0x20f   : > { %v1267_v63 = vadd.f32 %v1239_v61, %v3299_v41  ;;  %v1266_v8 = vadd.f32 %v1237_v28, %v1218_v48  ;;  %v1291_v45 = vsel %vm646_vm3, %v1289_v60, %v1290_v25  ;;  %v1293_v19 = vsel %vm646_vm3, %v1290_v25, %v1292_v37 }
 0x210   : > { %v1327_v30 = vsel %vm683_vm4, %v1325_v53, %v1326_v44  ;;  %v1329_v5 = vsel %vm683_vm4, %v1326_v44, %v1328_v21  ;;  %v1672_v36 = vadd.f32 %v1372_v29, %v3855_v58  ;;  %v1357_v15 = vmul.f32 0.11111111, %v1349_v9 }
 0x211   : > { %v1314_v43 = vadd.f32 %v1291_v45, %v1263_v46  ;;  %v1315_v12 = vadd.f32 %v1293_v19, %v1264_v10  ;;  %v1295_v20 = vrot.slane %v1267_v63, 1  ;;  %v1331_v6 = vrot.slane %v1267_v63, 2 }
 0x212   : > { %v1294_v38 = vrot.slane %v1266_v8, 1  ;;  %v1330_v41 = vrot.slane %v1266_v8, 2  ;;  %v1243_v48 = vpop.permute.xlu1 %1242  ;;  %v1241_v35 = vpop.permute.xlu0 %1240  ;;  %v1680_v16 = vadd.f32 0.0009, %v1672_v36  ;;  %v1373_v22 = vsub.f32 %v1357_v15, %v3156_v3 }
 0x213   : > { %v1350_v11 = vadd.f32 %v1327_v30, %v1314_v43  ;;  %v1351_v37 = vadd.f32 %v1329_v5, %v1315_v12  ;;  %v1147_v21 = vsub.f32 %v3338_v55, %v3209_v33  ;;  %v1268_v46 = vadd.f32 %v1241_v35, %v1220_v18  ;;  %v3856_v5 = vld [vmem:[#allocation38_spill] sm:$0xff] }
 0x214   : > { %v1296_v7 = vsel %vm646_vm3, %v1294_v38, %v1295_v20  ;;  %v1332_v42 = vsel %vm683_vm4, %v1330_v41, %v1331_v6  ;;  %v3363_v10 = vmul.f32 %v1680_v16, %v3219_v57  ;;  %v1673_v60 = vadd.f32 %v1373_v22, %v1145_v17 }
 0x215   : > { %v1358_v53 = vmul.f32 0.11111111, %v1350_v11  ;;  %v1359_v25 = vmul.f32 0.11111111, %v1351_v37  ;;  %v1132_v44 = vmul.f32 0.11111111, %v3301_v51  ;;  %v1316_v61 = vadd.f32 %v1296_v7, %v1266_v8 }
 0x216   : > { %v1269_v3 = vadd.f32 %v1243_v48, %v3311_v4  ;;  %v1297_v28 = vrot.slane %v1268_v46, 1  ;;  %v1247_v29 = vpop.permute.xlu1 %1246  ;;  %v1245_v9 = vpop.permute.xlu0 %1244  ;;  %1998 = vrcp.f32 %v3363_v10  ;;  %v1681_v33 = vadd.f32 0.0009, %v1673_v60 }
 0x217   : > { %v1374_v55 = vsub.f32 %v1358_v53, %v3171_v31  ;;  %v1375_v18 = vsub.f32 %v1359_v25, %v3203_v13  ;;  %v1352_v57 = vadd.f32 %v1332_v42, %v1316_v61  ;;  %v1333_v45 = vrot.slane %v1268_v46, 2 }
 0x218   : > { %v1298_v17 = vsel %vm646_vm3, %v1295_v20, %v1297_v28  ;;  %v1271_v19 = vadd.f32 %v1247_v29, %v3324_v56  ;;  %v3373_v51 = vmul.f32 %v1681_v33, %v3229_v39  ;;  %v1222_v58 = vadd.f32 %v3167_v47, %v3856_v5  ;;  %v3860_v5 = vld [vmem:[#allocation30_spill] sm:$0xff] }
 0x219   : > { %v1674_v4 = vadd.f32 %v1374_v55, %v1146_v52  ;;  %v1675_v8 = vadd.f32 %v1375_v18, %v1147_v21  ;;  %v1317_v30 = vadd.f32 %v1298_v17, %v1267_v63  ;;  %v1133_v36 = vmul.f32 0.11111111, %v3307_v54  ;;  %v3857_v55 = vld [vmem:[#allocation26_spill] sm:$0xff] }
 0x21a   : > { %v1360_v31 = vmul.f32 0.11111111, %v1352_v57  ;;  %v1334_v13 = vsel %vm683_vm4, %v1331_v6, %v1333_v45  ;;  %v3379_v15 = vpop.permute.xlu1 %1406  ;;  %v3381_v43 = vpop.permute.xlu0 %1404  ;;  %2000 = vrcp.f32 %v3373_v51  ;;  %v1148_v52 = vsub.f32 %v1132_v44, %v3213_v34  ;;  %v3858_v57 = vld [vmem:[#allocation22_spill] sm:$0xff] }
 0x21b   : > { %v1682_v56 = vadd.f32 0.0009, %v1674_v4  ;;  %v1683_v39 = vadd.f32 0.0009, %v1675_v8  ;;  %v1353_v12 = vadd.f32 %v1334_v13, %v1317_v30  ;;  %v1302_v20 = vrot.slane %v1271_v19, 1  ;;  %v3859_v8 = vld [vmem:[#allocation41_spill] sm:$0xff] }
 0x21c   : > { %v1376_v63 = vsub.f32 %v1360_v31, %v3223_v26  ;;  %v1270_v47 = vadd.f32 %v1245_v9, %v1222_v58  ;;  %v1299_v38 = vrot.slane %v1269_v3, 1  ;;  %v1338_v35 = vrot.slane %v1271_v19, 2  ;;  %v3861_v58 = vld [vmem:[#allocation37_spill] sm:$0xff]  ;;  %v3862_v31 = vld [vmem:[#allocation11_spill] sm:$0xff] }
 0x21d   : > { %v3387_v54 = vmul.f32 %v1682_v56, %v3233_v49  ;;  %v3390_v6 = vmul.f32 %v1683_v39, %v3254_v0  ;;  %v1361_v41 = vmul.f32 0.11111111, %v1353_v12  ;;  %v1149_v34 = vsub.f32 %v1133_v36, %v3217_v24  ;;  %v3863_v12 = vld [vmem:[#allocation60_spill] sm:$0xff] }
 0x21e   : > { %v1676_v48 = vadd.f32 %v1376_v63, %v1148_v52  ;;  %v1300_v16 = vrot.slane %v1270_v47, 1  ;;  %v1336_v22 = vrot.slane %v1270_v47, 2  ;;  %v3392_v11 = vpop.permute.xlu1 %1410  ;;  %v3394_v37 = vpop.permute.xlu0 %1408  ;;  %v1335_v26 = vrot.slane %v1269_v3, 2  ;;  %v3864_v63 = vld [vmem:[#allocation61_spill] sm:$0xff] }
 0x21f   : > { %2002 = vrcp.f32 %v3387_v54  ;;  %v1377_v49 = vsub.f32 %v1361_v41, %v3237_v40  ;;  %v1608_v25 = vmul.f32 2.0, %v3134_v59  ;;  %v1669_v28 = vadd.f32 0.0001, %v3268_v2  ;;  %v3865_v41 = vld [vmem:[#allocation23_spill] sm:$0xff] }
 0x220   : > { %2004 = vrcp.f32 %v3390_v6  ;;  %v1684_v0 = vadd.f32 0.0009, %v1676_v48  ;;  %v1301_v21 = vsel %vm646_vm3, %v1299_v38, %v1300_v16  ;;  %v1303_v7 = vsel %vm646_vm3, %v1300_v16, %v1302_v20 }
 0x221   : > { %v1677_v42 = vadd.f32 %v1377_v49, %v1149_v34  ;;  %v1318_v46 = vadd.f32 %v1301_v21, %v1269_v3  ;;  %v1319_v60 = vadd.f32 %v1303_v7, %v1270_v47  ;;  %v1337_v53 = vsel %vm683_vm4, %v1335_v26, %v1336_v22 }
 0x222   : > { %v3405_v24 = vmul.f32 %v1684_v0, %v3260_v27  ;;  %v1339_v44 = vsel %vm683_vm4, %v1336_v22, %v1338_v35  ;;  %v3408_v40 = vpop.permute.xlu1 %1414  ;;  %v3410_v61 = vpop.permute.xlu0 %1412  ;;  %v1609_v18 = vmul.f32 2.0, %v3857_v55  ;;  %v1616_v17 = vmul.f32 %v1608_v25, %v3858_v57  ;;  %v3866_v35 = vld [vmem:[#allocation27_spill] sm:$0xff]  ;;  %v3867_v22 = vld [vmem:[#allocation42_spill] sm:$0xff] }
 0x223   : > { %v1685_v29 = vadd.f32 0.0009, %v1677_v42  ;;  %v1354_v9 = vadd.f32 %v1337_v53, %v1318_v46  ;;  %v1355_v33 = vadd.f32 %v1339_v44, %v1319_v60  ;;  %v1999_v3 = vpop.eup %1998  ;;  %v1610_v30 = vmul.f32 2.0, %v3859_v8  ;;  %v3868_v42 = vld [vmem:[#allocation62_spill] sm:$0xff]  ;;  %v3869_v60 = vld [vmem:[#allocation63_spill] sm:$0xff] }
 0x224   : > { %2006 = vrcp.f32 %v3405_v24  ;;  %v1704_v27 = vmul.f32 %v1999_v3, %v3363_v10  ;;  %v1611_v2 = vmul.f32 2.0, %v3860_v5  ;;  %v1612_v36 = vmul.f32 2.0, %v3861_v58 }
 0x225   : > { %v3417_v45 = vmul.f32 %v1685_v29, %v1669_v28  ;;  %v1362_v19 = vmul.f32 0.11111111, %v1354_v9  ;;  %v1363_v4 = vmul.f32 0.11111111, %v1355_v33  ;;  %v1617_v13 = vmul.f32 %v1609_v18, %v3862_v31  ;;  %v3870_v28 = vld [vmem:[#allocation40_spill] sm:$0xff] }
 0x226   : > { %v3423_v56 = vpop.permute.xlu1 %1418  ;;  %v3425_v39 = vpop.permute.xlu0 %1416  ;;  %v3430_v38 = vadd.f32 0.0001, %v1616_v17  ;;  %v1618_v48 = vmul.f32 %v1610_v30, %v3865_v41  ;;  %v1619_v16 = vmul.f32 %v1611_v2, %v3866_v35  ;;  %v1620_v34 = vmul.f32 %v1612_v36, %v3867_v22  ;;  %v3871_v30 = vld [vmem:[#allocation43_spill] sm:$0xff] }
 0x227   : > { %2008 = vrcp.f32 %v3417_v45  ;;  %v1378_v52 = vsub.f32 %v1362_v19, %v3863_v12  ;;  %v1379_v20 = vsub.f32 %v1363_v4, %v3864_v63  ;;  %v2001_v47 = vpop.eup %2000  ;;  %v1712_v26 = vsub.f32 2.0, %v1704_v27 }
 0x228   : > { %v1705_v49 = vmul.f32 %v2001_v47, %v3373_v51  ;;  %v3442_v7 = vadd.f32 0.0001, %v1617_v13  ;;  %v1670_v46 = vadd.f32 0.0001, %v3868_v42  ;;  %v1671_v53 = vadd.f32 0.0001, %v3869_v60 }
 0x229   : > { %v1678_v0 = vadd.f32 %v1378_v52, %v1150_v50  ;;  %v1679_v21 = vadd.f32 %v1379_v20, %v1151_v23  ;;  %v1613_v29 = vmul.f32 2.0, %v3870_v28  ;;  %v3447_v32 = vadd.f32 0.0001, %v1618_v48 }
 0x22a   : > { %v1423_v25 = vpop.permute.xlu1 %1422  ;;  %v1713_v9 = vsub.f32 2.0, %v1705_v49  ;;  %v3449_v14 = vadd.f32 0.0001, %v1619_v16  ;;  %v3451_v1 = vadd.f32 0.0001, %v1620_v34  ;;  %v3455_v62 = vmul.f32 %v3858_v57, %v3134_v59  ;;  %v3876_v49 = vld [vmem:[#allocation50_spill] sm:$0xff] }
 0x22b   : > { %v1421_v44 = vpop.permute.xlu0 %1420  ;;  %v1686_v33 = vadd.f32 0.0009, %v1678_v0  ;;  %v1687_v18 = vadd.f32 0.0009, %v1679_v21  ;;  %v1720_v23 = vmul.f32 %v1999_v3, %v1712_v26  ;;  %v3463_v2 = vmul.f32 %v1613_v29, %v3871_v30  ;;  %v3875_v26 = vld [vmem:[#allocation47_spill] sm:$0xff] }
 0x22c   : > { %v2003_v17 = vpop.eup %2002  ;;  %v3468_v12 = vmul.f32 %v3862_v31, %v3857_v55  ;;  %v3472_v59 = vmul.f32 %v3865_v41, %v3859_v8  ;;  %v1721_v3 = vmul.f32 %v2001_v47, %v1713_v9  ;;  %v3476_v63 = vmul.f32 %v3866_v35, %v3860_v5  ;;  %v3872_v55 = vld [vmem:[#allocation46_spill] sm:$0xff]  ;;  %v3873_v5 = vld [vmem:[#allocation45_spill] sm:$0xff]  ;;  %v3878_v9 = vld [vmem:[#allocation52_spill] sm:$0xff] }
 0x22d   : > { %v2005_v50 = vpop.eup %2004  ;;  %v1706_v27 = vmul.f32 %v2003_v17, %v3387_v54  ;;  %v3458_v19 = vmul.f32 %v1686_v33, %v1670_v46  ;;  %v3460_v4 = vmul.f32 %v1687_v18, %v1671_v53  ;;  %v3480_v20 = vmul.f32 %v3867_v22, %v3861_v58  ;;  %v3874_v22 = vld [vmem:[#allocation49_spill] sm:$0xff]  ;;  %v3877_v46 = vld [vmem:[#allocation51_spill] sm:$0xff] }
 0x22e   : > { %v1707_v36 = vmul.f32 %v2005_v50, %v3390_v6  ;;  %v1427_v13 = vpop.permute.xlu1 %1426  ;;  %v1441_v31 = vadd.f32 %v3379_v15, %v3872_v55  ;;  %v3487_v8 = vmul.f32 %v3871_v30, %v3870_v28  ;;  %v1728_v41 = vmul.f32 %v1720_v23, %v3363_v10  ;;  %v3879_v18 = vld [vmem:[#allocation53_spill] sm:$0xff] }
 0x22f   : > { %v1714_v57 = vsub.f32 2.0, %v1706_v27  ;;  %v1425_v52 = vpop.permute.xlu0 %1424  ;;  %2010 = vrcp.f32 %v3458_v19  ;;  %v1440_v58 = vadd.f32 %v3381_v43, %v3873_v5  ;;  %v1443_v34 = vadd.f32 %v3392_v11, %v3874_v22  ;;  %v3880_v27 = vld [vmem:[#allocation55_spill] sm:$0xff] }
 0x230   : > { %v1715_v48 = vsub.f32 2.0, %v1707_v36  ;;  %2012 = vrcp.f32 %v3460_v4  ;;  %v1442_v15 = vadd.f32 %v3394_v37, %v3875_v26  ;;  %v1445_v0 = vadd.f32 %v3408_v40, %v3876_v49  ;;  %v3883_v49 = vld [vmem:[#allocation57_spill] sm:$0xff] }
 0x231   : > { %v2007_v47 = vpop.eup %2006  ;;  %v1722_v16 = vmul.f32 %v2003_v17, %v1714_v57  ;;  %v1729_v10 = vmul.f32 %v1721_v3, %v3373_v51  ;;  %v1444_v60 = vadd.f32 %v3410_v61, %v3877_v46  ;;  %v1447_v37 = vadd.f32 %v3423_v56, %v3878_v9  ;;  %v3881_v56 = vld [vmem:[#allocation54_spill] sm:$0xff] }
 0x232   : > { %v1708_v35 = vmul.f32 %v2007_v47, %v3405_v24  ;;  %v1455_v21 = vpop.permute.xlu1 %1454  ;;  %v3501_v42 = vmul.f32 %v2005_v50, %v1715_v48  ;;  %v3511_v51 = vadd.f32 %v3425_v39, %v3879_v18  ;;  %v1736_v50 = vsub.f32 2.0, %v1728_v41 }
 0x233   : > { %v1489_v43 = vadd.f32 %v1455_v21, %v1441_v31  ;;  %v1453_v53 = vpop.permute.xlu0 %1452  ;;  %v1730_v29 = vmul.f32 %v1722_v16, %v3387_v54  ;;  %v3514_v61 = vadd.f32 %v1423_v25, %v3880_v27  ;;  %v3519_v55 = vadd.f32 %v1421_v44, %v3881_v56  ;;  %v3882_v31 = vld [vmem:[#allocation56_spill] sm:$0xff] }
 0x234   : > { %v2009_v28 = vpop.eup %2008  ;;  %v1716_v11 = vsub.f32 2.0, %v1708_v35  ;;  %v1488_v33 = vadd.f32 %v1453_v53, %v1440_v58  ;;  %v1731_v48 = vmul.f32 %v3501_v42, %v3390_v6  ;;  %v3522_v5 = vadd.f32 %v1427_v13, %v3882_v31 }
 0x235   : > { %v1709_v40 = vmul.f32 %v2009_v28, %v3417_v45  ;;  %v1513_v17 = vrot.slane %v1489_v43, 1  ;;  %v1549_v30 = vrot.slane %v1489_v43, 2  ;;  %v1737_v39 = vsub.f32 2.0, %v1729_v10 }
 0x236   : > { %v1512_v36 = vrot.slane %v1488_v33, 1  ;;  %v1548_v57 = vrot.slane %v1488_v33, 2  ;;  %v1459_v54 = vpop.permute.xlu1 %1458  ;;  %v3524_v35 = vmul.f32 %v2007_v47, %v1716_v11  ;;  %v1738_v22 = vsub.f32 2.0, %v1730_v29 }
 0x237   : > { %v1457_v58 = vpop.permute.xlu0 %1456  ;;  %v1717_v26 = vsub.f32 2.0, %v1709_v40  ;;  %v3528_v21 = vadd.f32 %v1425_v52, %v3883_v49  ;;  %v3530_v46 = vmul.f32 %v1736_v50, %v1720_v23  ;;  %v1491_v53 = vadd.f32 %v1459_v54, %v1443_v34 }
 0x238   : > { %v1514_v25 = vsel %vm646_vm3, %v1512_v36, %v1513_v17  ;;  %v1490_v41 = vadd.f32 %v1457_v58, %v1442_v15  ;;  %v1550_v44 = vsel %vm683_vm4, %v1548_v57, %v1549_v30  ;;  %v3533_v47 = vmul.f32 %v1737_v39, %v1721_v3 }
 0x239   : > { %v1540_v6 = vadd.f32 %v1514_v25, %v1488_v33  ;;  %v1739_v27 = vsub.f32 2.0, %v1731_v48  ;;  %v1732_v29 = vmul.f32 %v3524_v35, %v3405_v24  ;;  %v3538_v23 = vmul.f32 %v1738_v22, %v1722_v16 }
 0x23a   : > { %v1515_v13 = vrot.slane %v1490_v41, 1  ;;  %v1551_v9 = vrot.slane %v1490_v41, 2  ;;  %v1463_v10 = vpop.permute.xlu1 %1462  ;;  %v3540_v50 = vmul.f32 %v2009_v28, %v1717_v26  ;;  %v1517_v3 = vrot.slane %v1491_v53, 1 }
 0x23b   : > { %v1576_v18 = vadd.f32 %v1550_v44, %v1540_v6  ;;  %v1493_v11 = vadd.f32 %v1463_v10, %v1445_v0  ;;  %v1461_v15 = vpop.permute.xlu0 %1460  ;;  %v1553_v39 = vrot.slane %v1491_v53, 2  ;;  %v1747_v49 = vmul.f32 %v1739_v27, %v3501_v42 }
 0x23c   : > { %v1516_v52 = vsel %vm646_vm3, %v1513_v17, %v1515_v13  ;;  %v1492_v33 = vadd.f32 %v1461_v15, %v1444_v60  ;;  %v2011_v40 = vpop.eup %2010  ;;  %v1552_v0 = vsel %vm683_vm4, %v1549_v30, %v1551_v9  ;;  %v1740_v44 = vsub.f32 2.0, %v1732_v29 }
 0x23d   : > { %v1584_v34 = vmul.f32 0.11111111, %v1576_v18  ;;  %v1541_v36 = vadd.f32 %v1516_v52, %v1489_v43  ;;  %v1520_v57 = vrot.slane %v1493_v11, 1  ;;  %v2013_v54 = vpop.eup %2012  ;;  %v1556_v16 = vrot.slane %v1493_v11, 2 }
 0x23e   : > { %v1518_v48 = vrot.slane %v1492_v33, 1  ;;  %v1554_v56 = vrot.slane %v1492_v33, 2  ;;  %v1467_v31 = vpop.permute.xlu1 %1466  ;;  %v1710_v60 = vmul.f32 %v2011_v40, %v3458_v19  ;;  %v1711_v25 = vmul.f32 %v2013_v54, %v3460_v4 }
 0x23f   : > { %v1600_v24 = vsub.f32 %v1584_v34, %v3455_v62  ;;  %v1577_v17 = vadd.f32 %v1552_v0, %v1541_v36  ;;  %v3547_v43 = vadd.f32 %v1467_v31, %v1447_v37  ;;  %v1465_v26 = vpop.permute.xlu0 %1464 }
 0x240   : > { %v1519_v28 = vsel %vm646_vm3, %v1517_v3, %v1518_v48  ;;  %v1521_v58 = vsel %vm646_vm3, %v1518_v48, %v1520_v57  ;;  %v1555_v6 = vsel %vm683_vm4, %v1553_v39, %v1554_v56  ;;  %v1557_v10 = vsel %vm683_vm4, %v1554_v56, %v1556_v16 }
 0x241   : > { %v1632_v41 = vmul.f32 2.0, %v1600_v24  ;;  %v1585_v30 = vmul.f32 0.11111111, %v1577_v17  ;;  %v1542_v22 = vadd.f32 %v1519_v28, %v1491_v53  ;;  %v1543_v62 = vadd.f32 %v1521_v58, %v1492_v33 }
 0x242   : > { %v1471_v37 = vpop.permute.xlu1 %1470  ;;  %v1718_v11 = vsub.f32 2.0, %v1710_v60  ;;  %v1523_v52 = vrot.slane %v3547_v43, 1  ;;  %v1494_v53 = vadd.f32 %v1465_v26, %v3511_v51  ;;  %v1719_v34 = vsub.f32 2.0, %v1711_v25 }
 0x243   : > { %v1640_v13 = vadd.f32 0.0009, %v1632_v41  ;;  %v1601_v9 = vsub.f32 %v1585_v30, %v3468_v12  ;;  %v1578_v18 = vadd.f32 %v1555_v6, %v1542_v22  ;;  %v1579_v15 = vadd.f32 %v1557_v10, %v1543_v62  ;;  %v1469_v56 = vpop.permute.xlu0 %1468 }
 0x244   : > { %v1559_v36 = vrot.slane %v3547_v43, 2  ;;  %v1522_v12 = vrot.slane %v1494_v53, 1  ;;  %v1558_v57 = vrot.slane %v1494_v53, 2  ;;  %v3560_v3 = vmul.f32 %v3540_v50, %v3417_v45 }
 0x245   : > { %v1648_v42 = vmul.f32 %v1640_v13, %v3430_v38  ;;  %v1633_v27 = vmul.f32 2.0, %v1601_v9  ;;  %v1586_v33 = vmul.f32 0.11111111, %v1578_v18  ;;  %v1587_v29 = vmul.f32 0.11111111, %v1579_v15 }
 0x246   : > { %v3564_v31 = vmul.f32 %v2011_v40, %v1718_v11  ;;  %v3568_v24 = vmul.f32 %v1740_v44, %v3524_v35  ;;  %v1524_v39 = vsel %vm646_vm3, %v1522_v12, %v1523_v52  ;;  %v1475_v28 = vpop.permute.xlu1 %1474  ;;  %v1496_v40 = vadd.f32 %v1469_v56, %v3519_v55 }
 0x247   : > { %v1752_v0 = vmul.f32 %v3530_v46, %v1648_v42  ;;  %v1641_v48 = vadd.f32 0.0009, %v1633_v27  ;;  %v1602_v51 = vsub.f32 %v1586_v33, %v3472_v59  ;;  %v1603_v38 = vsub.f32 %v1587_v29, %v3476_v63  ;;  %v1473_v10 = vpop.permute.xlu0 %1472 }
 0x248   : > { %v1544_v60 = vadd.f32 %v1524_v39, %v1494_v53  ;;  %v3572_v46 = vmul.f32 %v2013_v54, %v1719_v34  ;;  %v1560_v59 = vsel %vm683_vm4, %v1558_v57, %v1559_v36  ;;  %v1525_v22 = vrot.slane %v1496_v40, 1 }
 0x249   : > { %v1760_v17 = vsub.f32 1.0, %v1752_v0  ;;  %v1649_v16 = vmul.f32 %v1641_v48, %v3442_v7  ;;  %v1634_v45 = vmul.f32 2.0, %v1602_v51  ;;  %v1635_v58 = vmul.f32 2.0, %v1603_v38 }
 0x24a   : > { %v1580_v41 = vadd.f32 %v1560_v59, %v1544_v60  ;;  %v1561_v26 = vrot.slane %v1496_v40, 2  ;;  %v1499_v7 = vadd.f32 %v1475_v28, %v3522_v5  ;;  %v1497_v55 = vadd.f32 %v1471_v37, %v3514_v61 }
 0x24b   : > { %v1768_v25 = vmul.f32 0.5, %v1760_v17  ;;  %v1753_v63 = vmul.f32 %v3533_v47, %v1649_v16  ;;  %v1642_v35 = vadd.f32 0.0009, %v1634_v45  ;;  %v1643_v30 = vadd.f32 0.0009, %v1635_v58 }
 0x24c   : > { %v1588_v44 = vmul.f32 0.11111111, %v1580_v41  ;;  %v1741_v9 = vsub.f32 2.0, %v3560_v3  ;;  %v1526_v47 = vsel %vm646_vm3, %v1523_v52, %v1525_v22  ;;  %v1530_v42 = vrot.slane %v1499_v7, 1 }
 0x24d   : > { %v1776_v62 = vmax.f32 %v1768_v25, 0.0  ;;  %v1761_v6 = vsub.f32 1.0, %v1753_v63  ;;  %v1650_v54 = vmul.f32 %v1642_v35, %v3447_v32  ;;  %v1651_v13 = vmul.f32 %v1643_v30, %v3449_v14 }
 0x24e   : > { %v1604_v5 = vsub.f32 %v1588_v44, %v3480_v20  ;;  %v1545_v34 = vadd.f32 %v1526_v47, %v3547_v43  ;;  %v1562_v32 = vsel %vm683_vm4, %v1559_v36, %v1561_v26  ;;  %v1498_v52 = vadd.f32 %v1473_v10, %v3528_v21 }
 0x24f   : > { %v1784_v18 = vmin.f32 %v1776_v62, 1.0  ;;  %v1769_v11 = vmul.f32 0.5, %v1761_v6  ;;  %v1754_v15 = vmul.f32 %v3538_v23, %v1650_v54  ;;  %v1755_v53 = vmul.f32 %v1747_v49, %v1651_v13  ;;  %v3885_v54 = vld [vmem:[#allocation65_spill] sm:$0xff] }
 0x250   : > { %v1636_v37 = vmul.f32 2.0, %v1604_v5  ;;  %v1527_v27 = vrot.slane %v1497_v55, 1  ;;  %v1581_v20 = vadd.f32 %v1562_v32, %v1545_v34  ;;  %v1566_v49 = vrot.slane %v1499_v7, 2 }
 0x251   : > { %1793 = vst.msk [vmem:[%s3588_s28] sm:$0xff] %vm1792_vm5, %v1784_v18  ;;  %v1777_v14 = vmax.f32 %v1769_v11, 0.0  ;;  %v1762_v61 = vsub.f32 1.0, %v1754_v15  ;;  %v1763_v23 = vsub.f32 1.0, %v1755_v53  ;;  %v1528_v36 = vrot.slane %v1498_v52, 1  ;;  %v3886_v18 = vld [vmem:[#allocation58_spill] sm:$0xff] }
 0x252   : > { %v1644_v29 = vadd.f32 0.0009, %v1636_v37  ;;  %v1563_v57 = vrot.slane %v1497_v55, 2  ;;  %v1589_v3 = vmul.f32 0.11111111, %v1581_v20  ;;  %v1564_v0 = vrot.slane %v1498_v52, 2 }
 0x253   : > { %v1785_v33 = vmin.f32 %v1777_v14, 1.0  ;;  %v1770_v43 = vmul.f32 0.5, %v1762_v61  ;;  %v1771_v12 = vmul.f32 0.5, %v1763_v23  ;;  %v1529_v56 = vsel %vm646_vm3, %v1527_v27, %v1528_v36  ;;  %v3887_v15 = vld [vmem:[#allocation59_spill] sm:$0xff] }
 0x254   : > { %v1652_v51 = vmul.f32 %v1644_v29, %v3451_v1  ;;  %v1531_v21 = vsel %vm646_vm3, %v1528_v36, %v1530_v42  ;;  %v1605_v39 = vsub.f32 %v1589_v3, %v3487_v8  ;;  %v1546_v17 = vadd.f32 %v1529_v56, %v1497_v55 }
 0x255   : > { %1794 = vst.msk [vmem:[%s3588_s28 + $0x8] sm:$0xff] %vm1792_vm5, %v1785_v33  ;;  %v1778_v48 = vmax.f32 %v1770_v43, 0.0  ;;  %v1779_v38 = vmax.f32 %v1771_v12, 0.0  ;;  %v1547_v16 = vadd.f32 %v1531_v21, %v1498_v52  ;;  %v1565_v28 = vsel %vm683_vm4, %v1563_v57, %v1564_v0 }
 0x256   : > { %v1756_v60 = vmul.f32 %v3568_v24, %v1652_v51  ;;  %v1567_v58 = vsel %vm683_vm4, %v1564_v0, %v1566_v49  ;;  %v1637_v1 = vmul.f32 2.0, %v1605_v39  ;;  %v1582_v40 = vadd.f32 %v1565_v28, %v1546_v17 }
 0x257   : > { %v1786_v45 = vmin.f32 %v1778_v48, 1.0  ;;  %v1787_v59 = vmin.f32 %v1779_v38, 1.0  ;;  %v1583_v25 = vadd.f32 %v1567_v58, %v1547_v16  ;;  %v1629_v63 = vadd.f32 0.0001, %v3463_v2  ;;  %v3884_v2 = vld [vmem:[#allocation64_spill] sm:$0xff] }
 0x258   : > { %v1734_v35 = vmul.f32 %v3564_v31, %v3458_v19  ;;  %v1764_v8 = vsub.f32 1.0, %v1756_v60  ;;  %v1735_v41 = vmul.f32 %v3572_v46, %v3460_v4  ;;  %v1645_v24 = vadd.f32 0.0009, %v1637_v1 }
 0x259   : > { %1795 = vst.msk [vmem:[%s3588_s28 + $0x10] sm:$0xff] %vm1792_vm5, %v1786_v45  ;;  %1796 = vst.msk [vmem:[%s3588_s28 + $0x18] sm:$0xff] %vm1792_vm5, %v1787_v59  ;;  %v1590_v30 = vmul.f32 0.11111111, %v1582_v40  ;;  %v1591_v22 = vmul.f32 0.11111111, %v1583_v25  ;;  %v1749_v7 = vmul.f32 %v1741_v9, %v3540_v50 }
 0x25a   : > { %v1772_v26 = vmul.f32 0.5, %v1764_v8  ;;  %v1653_v62 = vmul.f32 %v1645_v24, %v1629_v63  ;;  %v1742_v13 = vsub.f32 2.0, %v1734_v35  ;;  %v1743_v47 = vsub.f32 2.0, %v1735_v41 }
 0x25b   : > { %v1606_v6 = vsub.f32 %v1590_v30, %v3884_v2  ;;  %v1607_v19 = vsub.f32 %v1591_v22, %v3885_v54  ;;  %v1630_v11 = vadd.f32 0.0001, %v3886_v18  ;;  %v1631_v5 = vadd.f32 0.0001, %v3887_v15 }
 0x25c   : > { %v1780_v44 = vmax.f32 %v1772_v26, 0.0  ;;  %v1757_v55 = vmul.f32 %v1749_v7, %v1653_v62  ;;  %v1750_v32 = vmul.f32 %v1742_v13, %v3564_v31  ;;  %v1751_v14 = vmul.f32 %v1743_v47, %v3572_v46 }
 0x25d   : > { %v1638_v10 = vmul.f32 2.0, %v1606_v6  ;;  %v1639_v4 = vmul.f32 2.0, %v1607_v19 }
 0x25e   : > { %v1788_v53 = vmin.f32 %v1780_v44, 1.0  ;;  %v1765_v34 = vsub.f32 1.0, %v1757_v55 }
 0x25f   : > { %v1646_v50 = vadd.f32 0.0009, %v1638_v10  ;;  %v1647_v9 = vadd.f32 0.0009, %v1639_v4 }
 0x260   : > { %1797 = vst.msk [vmem:[%s3588_s28 + $0x20] sm:$0xff] %vm1792_vm5, %v1788_v53  ;;  %v1773_v42 = vmul.f32 0.5, %v1765_v34 }
 0x261   : > { %v1654_v61 = vmul.f32 %v1646_v50, %v1630_v11  ;;  %v1655_v37 = vmul.f32 %v1647_v9, %v1631_v5 }
 0x262   : > { %v1781_v52 = vmax.f32 %v1773_v42, 0.0 }
 0x263   : > { %v1758_v23 = vmul.f32 %v1750_v32, %v1654_v61  ;;  %v1759_v27 = vmul.f32 %v1751_v14, %v1655_v37 }
 0x264   : > { %v1789_v20 = vmin.f32 %v1781_v52, 1.0 }
 0x265   : > { %v1766_v49 = vsub.f32 1.0, %v1758_v23  ;;  %v1767_v33 = vsub.f32 1.0, %v1759_v27 }
 0x266   : > { %1798 = vst.msk [vmem:[%s3588_s28 + $0x28] sm:$0xff] %vm1792_vm5, %v1789_v20 }
 0x267   : > { %v1774_v43 = vmul.f32 0.5, %v1766_v49  ;;  %v1775_v29 = vmul.f32 0.5, %v1767_v33 }
 0x269   : > { %v1782_v31 = vmax.f32 %v1774_v43, 0.0  ;;  %v1783_v46 = vmax.f32 %v1775_v29, 0.0 }
 0x26b   : > { %v1790_v36 = vmin.f32 %v1782_v31, 1.0  ;;  %v1791_v12 = vmin.f32 %v1783_v46, 1.0 }
 0x26d   : > { %1799 = vst.msk [vmem:[%s3588_s28 + $0x30] sm:$0xff] %vm1792_vm5, %v1790_v36  ;;  %1800 = vst.msk [vmem:[%s3588_s28 + $0x38] sm:$0xff] %vm1792_vm5, %v1791_v12 }
 0x26e   : > { %2083 = shalt.err (!%p2080_p4)
}
 0x26f   : > { %s2084_s4 = scalar_lea.hbm %s3627_s23, 1024  ;;  %s2088_s5 = scalar_lea.hbm %s3678_s2, 2048 }
 0x270   : > { %p2085_p9 = scmp.ne.s32.totalorder %s3627_s23, %s2084_s4  ;;  %p2089_p5 = scmp.lt.s32.totalorder %s3627_s23, %s3678_s2 }
 0x271   : > { %p2090_p8 = scmp.lt.s32.totalorder %s2088_s5, %s2084_s4 }
 0x272   : > { %p2086_p11 = pnand %p2085_p9, %p3888_p1 }
 0x273   : > { %p2091_p6 = por %p2090_p8, %p2089_p5 }
 0x274   : > { %p2087_p3 = pneg %p2086_p11 }
 0x276   : > { %p2092_p13 = pnand %p2091_p6, %p2087_p3 }
 0x278   : > { %2095 = shalt.err (!%p2092_p13)
}
 0x279   : > { %s2149_s14 = smov 128   ;;  %s2150_s17 = smov 8  }
 0x27a   : > { %1943 = dma.vmem_to_hbm [thread:$0]  (%p3888_p1), %s3629_s24, 1024, %s3627_s23, %s1802_s13, %s2149_s14, %s2149_s14, %s2150_s17  }
 0x27b PF: > { %s1831_s28 = sand.u32 1, %s2126_s9   ;;  %p3889_p12 = scmp.ne.s32.totalorder %s3747_s22, 0 }
 0x27c   : > { %p3890_p7 = scmp.ge.s32.totalorder %s2138_s12, 2  ;;  %s1832_s19 = scalar_lea.sflag [#allocation4], %s1831_s28 }
 0x27e   : > { %p1953_p10 = pnand %p3890_p7, %p3889_p12 }
 0x280   : > { %p1954_p0 = pneg %p1953_p10 }
 0x282   : > { %2121 = dma.done.wait (%p1954_p0), %s1832_s19, 1024  }
 0x283   : > { %2123 = vsyncadd (%p1954_p0), %s1832_s19, 4294966272  ;;  %p18_p2 = scmp.ge.s32.totalorder %s2191_s15, 4   ;;  %s3891_s9 = smov %s2130_s10 }
 0x284   : > { %s3892_s10 = smov %s2134_s11  ;;  %s3893_s11 = smov %s2203_s18 }
 0x285   : > { %s3894_s12 = smov %s2191_s15  ;;  %20 = sbr.rel (!%p18_p2) target bundleno = 7 (0x7), region = 86 }
 0x28a   :  { %1837 = vsyncpa [#allocation3], 1 }
 0x28b   :  { %1839 = vsyncpa [#allocation3 + $0x1], 1 }
 0x28c   :  { %1840 = vsyncpa [#allocation6], 1 }
 0x28d   :  { %1842 = vsyncpa [#allocation6 + $0x1], 1 }
 0x28e   :  { %1843 = vsyncpa [#allocation4], 1 }
 0x28f   :  { %1845 = vsyncpa [#allocation4 + $0x1], 1 }

</bundles_post_ra>
